<compile_context>
chip_gen: v7x
topology: tpu7x:2x2x1
jax: 0.10.0
libtpu: 0.0.40
codegen_flags: <defaults>
</compile_context>

<pallas_src>
import numpy as np
import jax
import jax.numpy as jnp
from jax.experimental import pallas as pl
from jax.experimental.pallas import tpu as pltpu

# Small shapes consistent with the module's forward pass
B = 2                 # batch
MAXLEN = 8            # maxlen (sequence length)
H = 32                # hidden_size (BERT hidden)
HL = 16               # hidden_size_lstm
F = 8                 # num_of_filters
WINDOW_SIZES = (2, 3, 4)
N_CLASS = 4
C = H + 2 * HL        # conv in_channels = hidden_size + 2*hidden_size_lstm
HWMAX = max(WINDOW_SIZES)
NF = F * len(WINDOW_SIZES)


def _sigmoid(x):
    # single-EUP sigmoid: sigmoid(x) == 0.5 * (tanh(x/2) + 1)
    return 0.5 * jnp.tanh(0.5 * x) + 0.5


def make_kernel(L, nb, h, hl, nfilt, window_sizes, n_class):
    hwmax = max(window_sizes)
    nf = nfilt * len(window_sizes)
    c = h + 2 * hl

    def kernel(x_ref,        # [L, B, H]
               wx_ref,       # [H, 8*HL]      input weights, fwd | bwd on lanes
               bx_ref,       # [1, 8*HL]      gate biases, fwd | bwd
               wh_ref,       # [2, HL, 4*HL]  recurrent weights (fwd, bwd)
               hc_ref,       # [4, B, HL]     h0_f, h0_b, c0_f, c0_b
               cw_ref,       # [HWMAX, C, 3F] packed conv weights (zero-padded taps)
               cbl_ref,      # [2, 3F]        row0 = conv bias, row1 = last valid pos
               lin_ref,      # [3F+1, n_class] linear weight rows ; bias row
               out_ref,      # [B, n_class]
               cat_ref):     # scratch [L + HWMAX - 1, B, C]
        # Zero the scratch (also zeroes the HWMAX-1 padding rows the shifted conv
        # reads touch), then place x at its lane offset in the (fwd | x | bwd) layout.
        cat_ref[...] = jnp.zeros_like(cat_ref)
        cat_ref[0:L, :, hl:hl + h] = x_ref[...]

        # --- hoisted LSTM input projection, both directions in one matmul -------
        xp = (jnp.einsum('lbh,hg->lbg', x_ref[...], wx_ref[...],
                         preferred_element_type=jnp.float32)
              + bx_ref[...])                        # [L, B, 8*HL]
        xpf = xp[:, :, 0:4 * hl]                    # forward-direction preacts
        xpb = xp[:, :, 4 * hl:8 * hl]               # backward-direction preacts

        whf = wh_ref[0]
        whb = wh_ref[1]
        h_f = hc_ref[0]
        h_b = hc_ref[1]
        c_f = hc_ref[2]
        c_b = hc_ref[3]

        def gates(g):
            # one sigmoid pass + one tanh pass over the full [B, 4*HL] tile,
            # then select the gate lanes (PyTorch gate order: i, f, g, o).
            s = _sigmoid(g)
            th = jnp.tanh(g)
            return (s[:, 0 * hl:1 * hl], s[:, 1 * hl:2 * hl],
                    th[:, 2 * hl:3 * hl], s[:, 3 * hl:4 * hl])

        # --- interleaved, fully unrolled fwd/bwd recurrence ----------------------
        for t in range(L):
            tb = L - 1 - t
            g_f = xpf[t] + jnp.dot(h_f, whf, preferred_element_type=jnp.float32)
            g_b = xpb[tb] + jnp.dot(h_b, whb, preferred_element_type=jnp.float32)
            i_f, f_f, gg_f, o_f = gates(g_f)
            i_b, f_b, gg_b, o_b = gates(g_b)
            c_f = f_f * c_f + i_f * gg_f
            c_b = f_b * c_b + i_b * gg_b
            h_f = o_f * jnp.tanh(c_f)
            h_b = o_b * jnp.tanh(c_b)
            # write directly into the concatenated layout: (fwd | x | bwd)
            cat_ref[t, :, 0:hl] = h_f
            cat_ref[tb, :, hl + h:hl + h + hl] = h_b

        # --- all three Conv1d's fused: HWMAX shifted matmuls [L*B, C] @ [C, 3F] --
        acc = jnp.zeros((L, nb, nf), jnp.float32)
        for k in range(hwmax):
            acc = acc + jnp.einsum('pbc,cf->pbf', cat_ref[k:k + L], cw_ref[k],
                                   preferred_element_type=jnp.float32)
        bias = cbl_ref[0:1, :]                       # [1, 3F]
        limit = cbl_ref[1:2, :]                      # [1, 3F] last valid position per window
        acc = jnp.maximum(acc + bias, 0.0)           # bias + ReLU in one pass
        pos = jax.lax.broadcasted_iota(jnp.int32, (L, nb, nf), 0).astype(jnp.float32)
        acc = jnp.where(pos <= limit, acc, 0.0)      # mask invalid positions (ReLU >= 0)
        feat = jnp.max(acc, axis=0)                  # full-length max pool -> [B, 3F]

        # --- linear + softmax -----------------------------------------------------
        wlin = lin_ref[0:nf, :]
        blin = lin_ref[nf:nf + 1, :]
        logits = jnp.dot(feat, wlin, preferred_element_type=jnp.float32) + blin
        m = jnp.max(logits, axis=1, keepdims=True)
        e = jnp.exp(logits - m)
        out_ref[...] = e / jnp.sum(e, axis=1, keepdims=True)

    return kernel


def pack_params(params):
    """Pack 18 small parameter arrays into 7 lane-friendly VMEM buffers."""
    lstm_wx = jnp.concatenate([params['wxf'], params['wxb']], axis=1)        # [H, 8*HL]
    lstm_bx = jnp.concatenate([params['bf'], params['bb']], axis=1)          # [1, 8*HL]
    lstm_wh = jnp.stack([params['whf'], params['whb']], axis=0)              # [2, HL, 4*HL]
    h0c0 = jnp.concatenate([params['h0'], params['c0']], axis=0)             # [4, B, HL]
    # NOTE: conv weights here are [kernel, C_in, F]; real PyTorch Conv1d weights
    # ([F, C_in, kernel]) must be permuted (2, 1, 0) before packing.
    conv_w = jnp.concatenate(
        [jnp.pad(w, ((0, HWMAX - hw), (0, 0), (0, 0)))
         for hw, w in zip(WINDOW_SIZES, params['wc'])], axis=2)              # [HWMAX, C, 3F]
    conv_b = jnp.concatenate(list(params['bc']), axis=1)                     # [1, 3F]
    limits = jnp.concatenate(
        [jnp.full((1, F), float(MAXLEN - hw), jnp.float32)
         for hw in WINDOW_SIZES], axis=1)                                    # [1, 3F]
    conv_bl = jnp.concatenate([conv_b, limits], axis=0)                      # [2, 3F]
    lin = jnp.concatenate([params['wlin'], params['blin']], axis=0)          # [3F+1, n_class]
    return lstm_wx, lstm_bx, lstm_wh, h0c0, conv_w, conv_bl, lin


@jax.jit
def bert_lstm_cnn_forward(x_bert, packed):
    """x_bert: [B, L, H] (BERT last_hidden_state after (identity) dropout)."""
    x_lbh = jnp.transpose(x_bert, (1, 0, 2))     # x.permute(1, 0, 2)
    kernel = make_kernel(MAXLEN, B, H, HL, F, WINDOW_SIZES, N_CLASS)
    args = (x_lbh,) + tuple(packed)
    return pl.pallas_call(
        kernel,
        out_shape=jax.ShapeDtypeStruct((B, N_CLASS), jnp.float32),
        in_specs=[pl.BlockSpec(memory_space=pltpu.MemorySpace.VMEM)] * len(args),
        out_specs=pl.BlockSpec(memory_space=pltpu.MemorySpace.VMEM),
        scratch_shapes=[pltpu.VMEM((MAXLEN + HWMAX - 1, B, C), jnp.float32)],
    )(*args)


def reference_forward(x_bert, params):
    """Pure-JAX reference of the same forward pass (uses the unpacked params)."""
    x = jnp.transpose(x_bert, (1, 0, 2))          # [L, B, H]
    L = MAXLEN

    def step(x_t, hh, cc, wx, wh, b):
        g = x_t @ wx + hh @ wh + b
        i = _sigmoid(g[:, 0 * HL:1 * HL])
        f = _sigmoid(g[:, 1 * HL:2 * HL])
        gg = jnp.tanh(g[:, 2 * HL:3 * HL])
        o = _sigmoid(g[:, 3 * HL:4 * HL])
        cc = f * cc + i * gg
        hh = o * jnp.tanh(cc)
        return hh, cc

    hh, cc = params['h0'][0], params['c0'][0]
    fwd = []
    for t in range(L):
        hh, cc = step(x[t], hh, cc, params['wxf'], params['whf'], params['bf'])
        fwd.append(hh)
    hh, cc = params['h0'][1], params['c0'][1]
    bwd = [None] * L
    for t in range(L - 1, -1, -1):
        hh, cc = step(x[t], hh, cc, params['wxb'], params['whb'], params['bb'])
        bwd[t] = hh
    cat = jnp.concatenate([jnp.stack(fwd), x, jnp.stack(bwd)], axis=-1)  # [L, B, C]

    feats = []
    for hw, w, b in zip(WINDOW_SIZES, params['wc'], params['bc']):
        lout = L - hw + 1
        acc = jnp.zeros((lout, B, F), jnp.float32) + b
        for k in range(hw):
            acc = acc + jnp.einsum('lbc,cf->lbf', cat[k:k + lout], w[k])
        acc = jnp.maximum(acc, 0.0)
        feats.append(jnp.max(acc, axis=0))
    feat = jnp.concatenate(feats, axis=-1)                               # [B, 3F]
    logits = feat @ params['wlin'] + params['blin']
    return jax.nn.softmax(logits, axis=1)


if __name__ == "__main__":
    key = jax.random.PRNGKey(0)
    ks = list(jax.random.split(key, 24))

    def init(k, shape, scale=0.1):
        return jax.random.normal(k, shape, dtype=jnp.float32) * scale

    # TODO(synk): the pretrained BERT encoder is replaced by a deterministic
    # embedding-lookup stand-in producing last_hidden_state [B, L, H].
    vocab = 30
    emb_tbl = init(ks[0], (vocab, H))
    type_tbl = init(ks[1], (2, H))
    input_ids = jax.random.randint(ks[2], (B, MAXLEN), 0, vocab)
    token_type_ids = jnp.zeros((B, MAXLEN), jnp.int32)
    # attention_mask would only be consumed inside the real BERT attention.
    last_hidden = emb_tbl[input_ids] + type_tbl[token_type_ids]          # [B, L, H]
    # TODO(synk): nn.Dropout(0.5) treated as identity (eval-mode forward).
    x = last_hidden

    params = {
        'wxf': init(ks[3], (H, 4 * HL)),
        'whf': init(ks[4], (HL, 4 * HL)),
        'bf':  init(ks[5], (1, 4 * HL)),
        'wxb': init(ks[6], (H, 4 * HL)),
        'whb': init(ks[7], (HL, 4 * HL)),
        'bb':  init(ks[8], (1, 4 * HL)),
        # h0/c0 are torch.randn(...) in the PyTorch forward; drawn deterministically here
        'h0':  init(ks[9], (2, B, HL), 1.0),
        'c0':  init(ks[10], (2, B, HL), 1.0),
        'wc':  [init(ks[11 + i], (hw, C, F)) for i, hw in enumerate(WINDOW_SIZES)],
        'bc':  [init(ks[14 + i], (1, F)) for i in range(len(WINDOW_SIZES))],
        'wlin': init(ks[17], (NF, N_CLASS)),
        'blin': init(ks[18], (1, N_CLASS)),
    }

    packed = pack_params(params)
    out = bert_lstm_cnn_forward(x, packed)
    out = jax.block_until_ready(out)

    assert out.shape == (B, N_CLASS)
    assert bool(jnp.all(jnp.isfinite(out)))
    ref = reference_forward(x, params)
    np.testing.assert_allclose(np.asarray(out), np.asarray(ref), rtol=2e-2, atol=2e-2)
    print("KERNEL_OK")
</pallas_src>

<mosaic_0001>
module attributes {stable_mosaic.version = 11 : i64} {
  func.func @kernel(%arg0: memref<8x2x32xf32, #tpu.memory_space<vmem>>, %arg1: memref<32x128xf32, #tpu.memory_space<vmem>>, %arg2: memref<1x128xf32, #tpu.memory_space<vmem>>, %arg3: memref<2x16x64xf32, #tpu.memory_space<vmem>>, %arg4: memref<4x2x16xf32, #tpu.memory_space<vmem>>, %arg5: memref<4x64x24xf32, #tpu.memory_space<vmem>>, %arg6: memref<2x24xf32, #tpu.memory_space<vmem>>, %arg7: memref<25x4xf32, #tpu.memory_space<vmem>>, %arg8: memref<2x4xf32, #tpu.memory_space<vmem>>, %arg9: memref<11x2x64xf32, #tpu.memory_space<vmem>>) attributes {dimension_semantics = [], scalar_prefetch = 0 : i64, scratch_operands = 1 : i64, tpu.core_type = #tpu.core_type<tc>} {
    %cst = arith.constant 0.000000e+00 : f32
    %0 = vector.broadcast %cst : f32 to vector<11x2x64xf32>
    %c0 = arith.constant 0 : index
    %c0_0 = arith.constant 0 : index
    %c0_1 = arith.constant 0 : index
    %1 = vector.load %arg9[%c0, %c0_0, %c0_1] : memref<11x2x64xf32, #tpu.memory_space<vmem>>, vector<11x2x64xf32>
    tpu.vector_store %arg9[%c0, %c0_0, %c0_1], %0 {strides = array<i32>} : memref<11x2x64xf32, #tpu.memory_space<vmem>>, vector<11x2x64xf32>,
    %c0_2 = arith.constant 0 : index
    %c0_3 = arith.constant 0 : index
    %c0_4 = arith.constant 0 : index
    %2 = vector.load %arg0[%c0_2, %c0_3, %c0_4] : memref<8x2x32xf32, #tpu.memory_space<vmem>>, vector<8x2x32xf32>
    %c0_5 = arith.constant 0 : index
    %c0_6 = arith.constant 0 : index
    %c16 = arith.constant 16 : index
    %3 = vector.load %arg9[%c0_5, %c0_6, %c16] : memref<11x2x64xf32, #tpu.memory_space<vmem>>, vector<8x2x32xf32>
    tpu.vector_store %arg9[%c0_5, %c0_6, %c16], %2 {strides = array<i32>} : memref<11x2x64xf32, #tpu.memory_space<vmem>>, vector<8x2x32xf32>,
    %c0_7 = arith.constant 0 : index
    %c0_8 = arith.constant 0 : index
    %c0_9 = arith.constant 0 : index
    %4 = vector.load %arg0[%c0_7, %c0_8, %c0_9] : memref<8x2x32xf32, #tpu.memory_space<vmem>>, vector<8x2x32xf32>
    %c0_10 = arith.constant 0 : index
    %c0_11 = arith.constant 0 : index
    %5 = vector.load %arg1[%c0_10, %c0_11] : memref<32x128xf32, #tpu.memory_space<vmem>>, vector<32x128xf32>
    "tpu.trace_start"() <{level = 10 : i32, message = "lbh,hg->lbg"}> : () -> ()
    %cst_12 = arith.constant dense<0.000000e+00> : vector<8x2x128xf32>
    %6 = tpu.matmul %4, %5, %cst_12 {dimension_numbers = #tpu.dot_dimension_numbers<[2], [0], [0, 1], [1], [0, 0, 0, 1, 1, 1], [], []>} : vector<8x2x32xf32>, vector<32x128xf32>, vector<8x2x128xf32> -> vector<8x2x128xf32>
    "tpu.trace_stop"() : () -> ()
    %c0_13 = arith.constant 0 : index
    %c0_14 = arith.constant 0 : index
    %7 = vector.load %arg2[%c0_13, %c0_14] : memref<1x128xf32, #tpu.memory_space<vmem>>, vector<1x128xf32>
    %8 = vector.shape_cast %7 : vector<1x128xf32> to vector<1x1x128xf32>
    %9 = vector.broadcast %8 : vector<1x1x128xf32> to vector<8x2x128xf32>
    %10 = arith.addf %6, %9 : vector<8x2x128xf32>
    %11 = vector.extract_strided_slice %10 {offsets = [0, 0, 0], sizes = [8, 2, 64], strides = [1, 1, 1]} : vector<8x2x128xf32> to vector<8x2x64xf32>
    %12 = vector.extract_strided_slice %10 {offsets = [0, 0, 64], sizes = [8, 2, 64], strides = [1, 1, 1]} : vector<8x2x128xf32> to vector<8x2x64xf32>
    %c0_15 = arith.constant 0 : index
    %c0_16 = arith.constant 0 : index
    %c0_17 = arith.constant 0 : index
    %13 = vector.load %arg3[%c0_15, %c0_16, %c0_17] : memref<2x16x64xf32, #tpu.memory_space<vmem>>, vector<1x16x64xf32>
    %14 = vector.shape_cast %13 : vector<1x16x64xf32> to vector<16x64xf32>
    %c1 = arith.constant 1 : index
    %c0_18 = arith.constant 0 : index
    %c0_19 = arith.constant 0 : index
    %15 = vector.load %arg3[%c1, %c0_18, %c0_19] : memref<2x16x64xf32, #tpu.memory_space<vmem>>, vector<1x16x64xf32>
    %16 = vector.shape_cast %15 : vector<1x16x64xf32> to vector<16x64xf32>
    %c0_20 = arith.constant 0 : index
    %c0_21 = arith.constant 0 : index
    %c0_22 = arith.constant 0 : index
    %17 = vector.load %arg4[%c0_20, %c0_21, %c0_22] : memref<4x2x16xf32, #tpu.memory_space<vmem>>, vector<1x2x16xf32>
    %18 = vector.shape_cast %17 : vector<1x2x16xf32> to vector<2x16xf32>
    %c1_23 = arith.constant 1 : index
    %c0_24 = arith.constant 0 : index
    %c0_25 = arith.constant 0 : index
    %19 = vector.load %arg4[%c1_23, %c0_24, %c0_25] : memref<4x2x16xf32, #tpu.memory_space<vmem>>, vector<1x2x16xf32>
    %20 = vector.shape_cast %19 : vector<1x2x16xf32> to vector<2x16xf32>
    %c2 = arith.constant 2 : index
    %c0_26 = arith.constant 0 : index
    %c0_27 = arith.constant 0 : index
    %21 = vector.load %arg4[%c2, %c0_26, %c0_27] : memref<4x2x16xf32, #tpu.memory_space<vmem>>, vector<1x2x16xf32>
    %22 = vector.shape_cast %21 : vector<1x2x16xf32> to vector<2x16xf32>
    %c3 = arith.constant 3 : index
    %c0_28 = arith.constant 0 : index
    %c0_29 = arith.constant 0 : index
    %23 = vector.load %arg4[%c3, %c0_28, %c0_29] : memref<4x2x16xf32, #tpu.memory_space<vmem>>, vector<1x2x16xf32>
    %24 = vector.shape_cast %23 : vector<1x2x16xf32> to vector<2x16xf32>
    %25 = vector.extract_strided_slice %11 {offsets = [0, 0, 0], sizes = [1, 2, 64], strides = [1, 1, 1]} : vector<8x2x64xf32> to vector<1x2x64xf32>
    %26 = vector.shape_cast %25 : vector<1x2x64xf32> to vector<2x64xf32>
    %cst_30 = arith.constant dense<0.000000e+00> : vector<2x64xf32>
    %27 = tpu.matmul %18, %14, %cst_30 {dimension_numbers = #tpu.dot_dimension_numbers<[1], [0], [0], [1], [0, 0, 1, 1], [], []>} : vector<2x16xf32>, vector<16x64xf32>, vector<2x64xf32> -> vector<2x64xf32>
    %28 = arith.addf %26, %27 : vector<2x64xf32>
    %29 = vector.extract_strided_slice %12 {offsets = [7, 0, 0], sizes = [1, 2, 64], strides = [1, 1, 1]} : vector<8x2x64xf32> to vector<1x2x64xf32>
    %30 = vector.shape_cast %29 : vector<1x2x64xf32> to vector<2x64xf32>
    %cst_31 = arith.constant dense<0.000000e+00> : vector<2x64xf32>
    %31 = tpu.matmul %20, %16, %cst_31 {dimension_numbers = #tpu.dot_dimension_numbers<[1], [0], [0], [1], [0, 0, 1, 1], [], []>} : vector<2x16xf32>, vector<16x64xf32>, vector<2x64xf32> -> vector<2x64xf32>
    %32 = arith.addf %30, %31 : vector<2x64xf32>
    %cst_32 = arith.constant 5.000000e-01 : f32
    %33 = vector.broadcast %cst_32 : f32 to vector<2x64xf32>
    %34 = arith.mulf %33, %28 : vector<2x64xf32>
    %35 = math.tanh %34 : vector<2x64xf32>
    %cst_33 = arith.constant 5.000000e-01 : f32
    %36 = vector.broadcast %cst_33 : f32 to vector<2x64xf32>
    %37 = arith.mulf %36, %35 : vector<2x64xf32>
    %cst_34 = arith.constant 5.000000e-01 : f32
    %38 = vector.broadcast %cst_34 : f32 to vector<2x64xf32>
    %39 = arith.addf %37, %38 : vector<2x64xf32>
    %40 = math.tanh %28 : vector<2x64xf32>
    %41 = vector.extract_strided_slice %39 {offsets = [0, 0], sizes = [2, 16], strides = [1, 1]} : vector<2x64xf32> to vector<2x16xf32>
    %42 = vector.extract_strided_slice %39 {offsets = [0, 16], sizes = [2, 16], strides = [1, 1]} : vector<2x64xf32> to vector<2x16xf32>
    %43 = vector.extract_strided_slice %40 {offsets = [0, 32], sizes = [2, 16], strides = [1, 1]} : vector<2x64xf32> to vector<2x16xf32>
    %44 = vector.extract_strided_slice %39 {offsets = [0, 48], sizes = [2, 16], strides = [1, 1]} : vector<2x64xf32> to vector<2x16xf32>
    %cst_35 = arith.constant 5.000000e-01 : f32
    %45 = vector.broadcast %cst_35 : f32 to vector<2x64xf32>
    %46 = arith.mulf %45, %32 : vector<2x64xf32>
    %47 = math.tanh %46 : vector<2x64xf32>
    %cst_36 = arith.constant 5.000000e-01 : f32
    %48 = vector.broadcast %cst_36 : f32 to vector<2x64xf32>
    %49 = arith.mulf %48, %47 : vector<2x64xf32>
    %cst_37 = arith.constant 5.000000e-01 : f32
    %50 = vector.broadcast %cst_37 : f32 to vector<2x64xf32>
    %51 = arith.addf %49, %50 : vector<2x64xf32>
    %52 = math.tanh %32 : vector<2x64xf32>
    %53 = vector.extract_strided_slice %51 {offsets = [0, 0], sizes = [2, 16], strides = [1, 1]} : vector<2x64xf32> to vector<2x16xf32>
    %54 = vector.extract_strided_slice %51 {offsets = [0, 16], sizes = [2, 16], strides = [1, 1]} : vector<2x64xf32> to vector<2x16xf32>
    %55 = vector.extract_strided_slice %52 {offsets = [0, 32], sizes = [2, 16], strides = [1, 1]} : vector<2x64xf32> to vector<2x16xf32>
    %56 = vector.extract_strided_slice %51 {offsets = [0, 48], sizes = [2, 16], strides = [1, 1]} : vector<2x64xf32> to vector<2x16xf32>
    %57 = arith.mulf %42, %22 : vector<2x16xf32>
    %58 = arith.mulf %41, %43 : vector<2x16xf32>
    %59 = arith.addf %57, %58 : vector<2x16xf32>
    %60 = arith.mulf %54, %24 : vector<2x16xf32>
    %61 = arith.mulf %53, %55 : vector<2x16xf32>
    %62 = arith.addf %60, %61 : vector<2x16xf32>
    %63 = math.tanh %59 : vector<2x16xf32>
    %64 = arith.mulf %44, %63 : vector<2x16xf32>
    %65 = math.tanh %62 : vector<2x16xf32>
    %66 = arith.mulf %56, %65 : vector<2x16xf32>
    %c0_38 = arith.constant 0 : index
    %c0_39 = arith.constant 0 : index
    %c0_40 = arith.constant 0 : index
    %67 = vector.load %arg9[%c0_38, %c0_39, %c0_40] : memref<11x2x64xf32, #tpu.memory_space<vmem>>, vector<1x2x16xf32>
    %68 = vector.shape_cast %67 : vector<1x2x16xf32> to vector<2x16xf32>
    %69 = vector.shape_cast %64 : vector<2x16xf32> to vector<1x2x16xf32>
    tpu.vector_store %arg9[%c0_38, %c0_39, %c0_40], %69 {strides = array<i32>} : memref<11x2x64xf32, #tpu.memory_space<vmem>>, vector<1x2x16xf32>,
    %c7 = arith.constant 7 : index
    %c0_41 = arith.constant 0 : index
    %c48 = arith.constant 48 : index
    %70 = vector.load %arg9[%c7, %c0_41, %c48] : memref<11x2x64xf32, #tpu.memory_space<vmem>>, vector<1x2x16xf32>
    %71 = vector.shape_cast %70 : vector<1x2x16xf32> to vector<2x16xf32>
    %72 = vector.shape_cast %66 : vector<2x16xf32> to vector<1x2x16xf32>
    tpu.vector_store %arg9[%c7, %c0_41, %c48], %72 {strides = array<i32>} : memref<11x2x64xf32, #tpu.memory_space<vmem>>, vector<1x2x16xf32>,
    %73 = vector.extract_strided_slice %11 {offsets = [1, 0, 0], sizes = [1, 2, 64], strides = [1, 1, 1]} : vector<8x2x64xf32> to vector<1x2x64xf32>
    %74 = vector.shape_cast %73 : vector<1x2x64xf32> to vector<2x64xf32>
    %cst_42 = arith.constant dense<0.000000e+00> : vector<2x64xf32>
    %75 = tpu.matmul %64, %14, %cst_42 {dimension_numbers = #tpu.dot_dimension_numbers<[1], [0], [0], [1], [0, 0, 1, 1], [], []>} : vector<2x16xf32>, vector<16x64xf32>, vector<2x64xf32> -> vector<2x64xf32>
    %76 = arith.addf %74, %75 : vector<2x64xf32>
    %77 = vector.extract_strided_slice %12 {offsets = [6, 0, 0], sizes = [1, 2, 64], strides = [1, 1, 1]} : vector<8x2x64xf32> to vector<1x2x64xf32>
    %78 = vector.shape_cast %77 : vector<1x2x64xf32> to vector<2x64xf32>
    %cst_43 = arith.constant dense<0.000000e+00> : vector<2x64xf32>
    %79 = tpu.matmul %66, %16, %cst_43 {dimension_numbers = #tpu.dot_dimension_numbers<[1], [0], [0], [1], [0, 0, 1, 1], [], []>} : vector<2x16xf32>, vector<16x64xf32>, vector<2x64xf32> -> vector<2x64xf32>
    %80 = arith.addf %78, %79 : vector<2x64xf32>
    %cst_44 = arith.constant 5.000000e-01 : f32
    %81 = vector.broadcast %cst_44 : f32 to vector<2x64xf32>
    %82 = arith.mulf %81, %76 : vector<2x64xf32>
    %83 = math.tanh %82 : vector<2x64xf32>
    %cst_45 = arith.constant 5.000000e-01 : f32
    %84 = vector.broadcast %cst_45 : f32 to vector<2x64xf32>
    %85 = arith.mulf %84, %83 : vector<2x64xf32>
    %cst_46 = arith.constant 5.000000e-01 : f32
    %86 = vector.broadcast %cst_46 : f32 to vector<2x64xf32>
    %87 = arith.addf %85, %86 : vector<2x64xf32>
    %88 = math.tanh %76 : vector<2x64xf32>
    %89 = vector.extract_strided_slice %87 {offsets = [0, 0], sizes = [2, 16], strides = [1, 1]} : vector<2x64xf32> to vector<2x16xf32>
    %90 = vector.extract_strided_slice %87 {offsets = [0, 16], sizes = [2, 16], strides = [1, 1]} : vector<2x64xf32> to vector<2x16xf32>
    %91 = vector.extract_strided_slice %88 {offsets = [0, 32], sizes = [2, 16], strides = [1, 1]} : vector<2x64xf32> to vector<2x16xf32>
    %92 = vector.extract_strided_slice %87 {offsets = [0, 48], sizes = [2, 16], strides = [1, 1]} : vector<2x64xf32> to vector<2x16xf32>
    %cst_47 = arith.constant 5.000000e-01 : f32
    %93 = vector.broadcast %cst_47 : f32 to vector<2x64xf32>
    %94 = arith.mulf %93, %80 : vector<2x64xf32>
    %95 = math.tanh %94 : vector<2x64xf32>
    %cst_48 = arith.constant 5.000000e-01 : f32
    %96 = vector.broadcast %cst_48 : f32 to vector<2x64xf32>
    %97 = arith.mulf %96, %95 : vector<2x64xf32>
    %cst_49 = arith.constant 5.000000e-01 : f32
    %98 = vector.broadcast %cst_49 : f32 to vector<2x64xf32>
    %99 = arith.addf %97, %98 : vector<2x64xf32>
    %100 = math.tanh %80 : vector<2x64xf32>
    %101 = vector.extract_strided_slice %99 {offsets = [0, 0], sizes = [2, 16], strides = [1, 1]} : vector<2x64xf32> to vector<2x16xf32>
    %102 = vector.extract_strided_slice %99 {offsets = [0, 16], sizes = [2, 16], strides = [1, 1]} : vector<2x64xf32> to vector<2x16xf32>
    %103 = vector.extract_strided_slice %100 {offsets = [0, 32], sizes = [2, 16], strides = [1, 1]} : vector<2x64xf32> to vector<2x16xf32>
    %104 = vector.extract_strided_slice %99 {offsets = [0, 48], sizes = [2, 16], strides = [1, 1]} : vector<2x64xf32> to vector<2x16xf32>
    %105 = arith.mulf %90, %59 : vector<2x16xf32>
    %106 = arith.mulf %89, %91 : vector<2x16xf32>
    %107 = arith.addf %105, %106 : vector<2x16xf32>
    %108 = arith.mulf %102, %62 : vector<2x16xf32>
    %109 = arith.mulf %101, %103 : vector<2x16xf32>
    %110 = arith.addf %108, %109 : vector<2x16xf32>
    %111 = math.tanh %107 : vector<2x16xf32>
    %112 = arith.mulf %92, %111 : vector<2x16xf32>
    %113 = math.tanh %110 : vector<2x16xf32>
    %114 = arith.mulf %104, %113 : vector<2x16xf32>
    %c1_50 = arith.constant 1 : index
    %c0_51 = arith.constant 0 : index
    %c0_52 = arith.constant 0 : index
    %115 = vector.load %arg9[%c1_50, %c0_51, %c0_52] : memref<11x2x64xf32, #tpu.memory_space<vmem>>, vector<1x2x16xf32>
    %116 = vector.shape_cast %115 : vector<1x2x16xf32> to vector<2x16xf32>
    %117 = vector.shape_cast %112 : vector<2x16xf32> to vector<1x2x16xf32>
    tpu.vector_store %arg9[%c1_50, %c0_51, %c0_52], %117 {strides = array<i32>} : memref<11x2x64xf32, #tpu.memory_space<vmem>>, vector<1x2x16xf32>,
    %c6 = arith.constant 6 : index
    %c0_53 = arith.constant 0 : index
    %c48_54 = arith.constant 48 : index
    %118 = vector.load %arg9[%c6, %c0_53, %c48_54] : memref<11x2x64xf32, #tpu.memory_space<vmem>>, vector<1x2x16xf32>
    %119 = vector.shape_cast %118 : vector<1x2x16xf32> to vector<2x16xf32>
    %120 = vector.shape_cast %114 : vector<2x16xf32> to vector<1x2x16xf32>
    tpu.vector_store %arg9[%c6, %c0_53, %c48_54], %120 {strides = array<i32>} : memref<11x2x64xf32, #tpu.memory_space<vmem>>, vector<1x2x16xf32>,
    %121 = vector.extract_strided_slice %11 {offsets = [2, 0, 0], sizes = [1, 2, 64], strides = [1, 1, 1]} : vector<8x2x64xf32> to vector<1x2x64xf32>
    %122 = vector.shape_cast %121 : vector<1x2x64xf32> to vector<2x64xf32>
    %cst_55 = arith.constant dense<0.000000e+00> : vector<2x64xf32>
    %123 = tpu.matmul %112, %14, %cst_55 {dimension_numbers = #tpu.dot_dimension_numbers<[1], [0], [0], [1], [0, 0, 1, 1], [], []>} : vector<2x16xf32>, vector<16x64xf32>, vector<2x64xf32> -> vector<2x64xf32>
    %124 = arith.addf %122, %123 : vector<2x64xf32>
    %125 = vector.extract_strided_slice %12 {offsets = [5, 0, 0], sizes = [1, 2, 64], strides = [1, 1, 1]} : vector<8x2x64xf32> to vector<1x2x64xf32>
    %126 = vector.shape_cast %125 : vector<1x2x64xf32> to vector<2x64xf32>
    %cst_56 = arith.constant dense<0.000000e+00> : vector<2x64xf32>
    %127 = tpu.matmul %114, %16, %cst_56 {dimension_numbers = #tpu.dot_dimension_numbers<[1], [0], [0], [1], [0, 0, 1, 1], [], []>} : vector<2x16xf32>, vector<16x64xf32>, vector<2x64xf32> -> vector<2x64xf32>
    %128 = arith.addf %126, %127 : vector<2x64xf32>
    %cst_57 = arith.constant 5.000000e-01 : f32
    %129 = vector.broadcast %cst_57 : f32 to vector<2x64xf32>
    %130 = arith.mulf %129, %124 : vector<2x64xf32>
    %131 = math.tanh %130 : vector<2x64xf32>
    %cst_58 = arith.constant 5.000000e-01 : f32
    %132 = vector.broadcast %cst_58 : f32 to vector<2x64xf32>
    %133 = arith.mulf %132, %131 : vector<2x64xf32>
    %cst_59 = arith.constant 5.000000e-01 : f32
    %134 = vector.broadcast %cst_59 : f32 to vector<2x64xf32>
    %135 = arith.addf %133, %134 : vector<2x64xf32>
    %136 = math.tanh %124 : vector<2x64xf32>
    %137 = vector.extract_strided_slice %135 {offsets = [0, 0], sizes = [2, 16], strides = [1, 1]} : vector<2x64xf32> to vector<2x16xf32>
    %138 = vector.extract_strided_slice %135 {offsets = [0, 16], sizes = [2, 16], strides = [1, 1]} : vector<2x64xf32> to vector<2x16xf32>
    %139 = vector.extract_strided_slice %136 {offsets = [0, 32], sizes = [2, 16], strides = [1, 1]} : vector<2x64xf32> to vector<2x16xf32>
    %140 = vector.extract_strided_slice %135 {offsets = [0, 48], sizes = [2, 16], strides = [1, 1]} : vector<2x64xf32> to vector<2x16xf32>
    %cst_60 = arith.constant 5.000000e-01 : f32
    %141 = vector.broadcast %cst_60 : f32 to vector<2x64xf32>
    %142 = arith.mulf %141, %128 : vector<2x64xf32>
    %143 = math.tanh %142 : vector<2x64xf32>
    %cst_61 = arith.constant 5.000000e-01 : f32
    %144 = vector.broadcast %cst_61 : f32 to vector<2x64xf32>
    %145 = arith.mulf %144, %143 : vector<2x64xf32>
    %cst_62 = arith.constant 5.000000e-01 : f32
    %146 = vector.broadcast %cst_62 : f32 to vector<2x64xf32>
    %147 = arith.addf %145, %146 : vector<2x64xf32>
    %148 = math.tanh %128 : vector<2x64xf32>
    %149 = vector.extract_strided_slice %147 {offsets = [0, 0], sizes = [2, 16], strides = [1, 1]} : vector<2x64xf32> to vector<2x16xf32>
    %150 = vector.extract_strided_slice %147 {offsets = [0, 16], sizes = [2, 16], strides = [1, 1]} : vector<2x64xf32> to vector<2x16xf32>
    %151 = vector.extract_strided_slice %148 {offsets = [0, 32], sizes = [2, 16], strides = [1, 1]} : vector<2x64xf32> to vector<2x16xf32>
    %152 = vector.extract_strided_slice %147 {offsets = [0, 48], sizes = [2, 16], strides = [1, 1]} : vector<2x64xf32> to vector<2x16xf32>
    %153 = arith.mulf %138, %107 : vector<2x16xf32>
    %154 = arith.mulf %137, %139 : vector<2x16xf32>
    %155 = arith.addf %153, %154 : vector<2x16xf32>
    %156 = arith.mulf %150, %110 : vector<2x16xf32>
    %157 = arith.mulf %149, %151 : vector<2x16xf32>
    %158 = arith.addf %156, %157 : vector<2x16xf32>
    %159 = math.tanh %155 : vector<2x16xf32>
    %160 = arith.mulf %140, %159 : vector<2x16xf32>
    %161 = math.tanh %158 : vector<2x16xf32>
    %162 = arith.mulf %152, %161 : vector<2x16xf32>
    %c2_63 = arith.constant 2 : index
    %c0_64 = arith.constant 0 : index
    %c0_65 = arith.constant 0 : index
    %163 = vector.load %arg9[%c2_63, %c0_64, %c0_65] : memref<11x2x64xf32, #tpu.memory_space<vmem>>, vector<1x2x16xf32>
    %164 = vector.shape_cast %163 : vector<1x2x16xf32> to vector<2x16xf32>
    %165 = vector.shape_cast %160 : vector<2x16xf32> to vector<1x2x16xf32>
    tpu.vector_store %arg9[%c2_63, %c0_64, %c0_65], %165 {strides = array<i32>} : memref<11x2x64xf32, #tpu.memory_space<vmem>>, vector<1x2x16xf32>,
    %c5 = arith.constant 5 : index
    %c0_66 = arith.constant 0 : index
    %c48_67 = arith.constant 48 : index
    %166 = vector.load %arg9[%c5, %c0_66, %c48_67] : memref<11x2x64xf32, #tpu.memory_space<vmem>>, vector<1x2x16xf32>
    %167 = vector.shape_cast %166 : vector<1x2x16xf32> to vector<2x16xf32>
    %168 = vector.shape_cast %162 : vector<2x16xf32> to vector<1x2x16xf32>
    tpu.vector_store %arg9[%c5, %c0_66, %c48_67], %168 {strides = array<i32>} : memref<11x2x64xf32, #tpu.memory_space<vmem>>, vector<1x2x16xf32>,
    %169 = vector.extract_strided_slice %11 {offsets = [3, 0, 0], sizes = [1, 2, 64], strides = [1, 1, 1]} : vector<8x2x64xf32> to vector<1x2x64xf32>
    %170 = vector.shape_cast %169 : vector<1x2x64xf32> to vector<2x64xf32>
    %cst_68 = arith.constant dense<0.000000e+00> : vector<2x64xf32>
    %171 = tpu.matmul %160, %14, %cst_68 {dimension_numbers = #tpu.dot_dimension_numbers<[1], [0], [0], [1], [0, 0, 1, 1], [], []>} : vector<2x16xf32>, vector<16x64xf32>, vector<2x64xf32> -> vector<2x64xf32>
    %172 = arith.addf %170, %171 : vector<2x64xf32>
    %173 = vector.extract_strided_slice %12 {offsets = [4, 0, 0], sizes = [1, 2, 64], strides = [1, 1, 1]} : vector<8x2x64xf32> to vector<1x2x64xf32>
    %174 = vector.shape_cast %173 : vector<1x2x64xf32> to vector<2x64xf32>
    %cst_69 = arith.constant dense<0.000000e+00> : vector<2x64xf32>
    %175 = tpu.matmul %162, %16, %cst_69 {dimension_numbers = #tpu.dot_dimension_numbers<[1], [0], [0], [1], [0, 0, 1, 1], [], []>} : vector<2x16xf32>, vector<16x64xf32>, vector<2x64xf32> -> vector<2x64xf32>
    %176 = arith.addf %174, %175 : vector<2x64xf32>
    %cst_70 = arith.constant 5.000000e-01 : f32
    %177 = vector.broadcast %cst_70 : f32 to vector<2x64xf32>
    %178 = arith.mulf %177, %172 : vector<2x64xf32>
    %179 = math.tanh %178 : vector<2x64xf32>
    %cst_71 = arith.constant 5.000000e-01 : f32
    %180 = vector.broadcast %cst_71 : f32 to vector<2x64xf32>
    %181 = arith.mulf %180, %179 : vector<2x64xf32>
    %cst_72 = arith.constant 5.000000e-01 : f32
    %182 = vector.broadcast %cst_72 : f32 to vector<2x64xf32>
    %183 = arith.addf %181, %182 : vector<2x64xf32>
    %184 = math.tanh %172 : vector<2x64xf32>
    %185 = vector.extract_strided_slice %183 {offsets = [0, 0], sizes = [2, 16], strides = [1, 1]} : vector<2x64xf32> to vector<2x16xf32>
    %186 = vector.extract_strided_slice %183 {offsets = [0, 16], sizes = [2, 16], strides = [1, 1]} : vector<2x64xf32> to vector<2x16xf32>
    %187 = vector.extract_strided_slice %184 {offsets = [0, 32], sizes = [2, 16], strides = [1, 1]} : vector<2x64xf32> to vector<2x16xf32>
    %188 = vector.extract_strided_slice %183 {offsets = [0, 48], sizes = [2, 16], strides = [1, 1]} : vector<2x64xf32> to vector<2x16xf32>
    %cst_73 = arith.constant 5.000000e-01 : f32
    %189 = vector.broadcast %cst_73 : f32 to vector<2x64xf32>
    %190 = arith.mulf %189, %176 : vector<2x64xf32>
    %191 = math.tanh %190 : vector<2x64xf32>
    %cst_74 = arith.constant 5.000000e-01 : f32
    %192 = vector.broadcast %cst_74 : f32 to vector<2x64xf32>
    %193 = arith.mulf %192, %191 : vector<2x64xf32>
    %cst_75 = arith.constant 5.000000e-01 : f32
    %194 = vector.broadcast %cst_75 : f32 to vector<2x64xf32>
    %195 = arith.addf %193, %194 : vector<2x64xf32>
    %196 = math.tanh %176 : vector<2x64xf32>
    %197 = vector.extract_strided_slice %195 {offsets = [0, 0], sizes = [2, 16], strides = [1, 1]} : vector<2x64xf32> to vector<2x16xf32>
    %198 = vector.extract_strided_slice %195 {offsets = [0, 16], sizes = [2, 16], strides = [1, 1]} : vector<2x64xf32> to vector<2x16xf32>
    %199 = vector.extract_strided_slice %196 {offsets = [0, 32], sizes = [2, 16], strides = [1, 1]} : vector<2x64xf32> to vector<2x16xf32>
    %200 = vector.extract_strided_slice %195 {offsets = [0, 48], sizes = [2, 16], strides = [1, 1]} : vector<2x64xf32> to vector<2x16xf32>
    %201 = arith.mulf %186, %155 : vector<2x16xf32>
    %202 = arith.mulf %185, %187 : vector<2x16xf32>
    %203 = arith.addf %201, %202 : vector<2x16xf32>
    %204 = arith.mulf %198, %158 : vector<2x16xf32>
    %205 = arith.mulf %197, %199 : vector<2x16xf32>
    %206 = arith.addf %204, %205 : vector<2x16xf32>
    %207 = math.tanh %203 : vector<2x16xf32>
    %208 = arith.mulf %188, %207 : vector<2x16xf32>
    %209 = math.tanh %206 : vector<2x16xf32>
    %210 = arith.mulf %200, %209 : vector<2x16xf32>
    %c3_76 = arith.constant 3 : index
    %c0_77 = arith.constant 0 : index
    %c0_78 = arith.constant 0 : index
    %211 = vector.load %arg9[%c3_76, %c0_77, %c0_78] : memref<11x2x64xf32, #tpu.memory_space<vmem>>, vector<1x2x16xf32>
    %212 = vector.shape_cast %211 : vector<1x2x16xf32> to vector<2x16xf32>
    %213 = vector.shape_cast %208 : vector<2x16xf32> to vector<1x2x16xf32>
    tpu.vector_store %arg9[%c3_76, %c0_77, %c0_78], %213 {strides = array<i32>} : memref<11x2x64xf32, #tpu.memory_space<vmem>>, vector<1x2x16xf32>,
    %c4 = arith.constant 4 : index
    %c0_79 = arith.constant 0 : index
    %c48_80 = arith.constant 48 : index
    %214 = vector.load %arg9[%c4, %c0_79, %c48_80] : memref<11x2x64xf32, #tpu.memory_space<vmem>>, vector<1x2x16xf32>
    %215 = vector.shape_cast %214 : vector<1x2x16xf32> to vector<2x16xf32>
    %216 = vector.shape_cast %210 : vector<2x16xf32> to vector<1x2x16xf32>
    tpu.vector_store %arg9[%c4, %c0_79, %c48_80], %216 {strides = array<i32>} : memref<11x2x64xf32, #tpu.memory_space<vmem>>, vector<1x2x16xf32>,
    %217 = vector.extract_strided_slice %11 {offsets = [4, 0, 0], sizes = [1, 2, 64], strides = [1, 1, 1]} : vector<8x2x64xf32> to vector<1x2x64xf32>
    %218 = vector.shape_cast %217 : vector<1x2x64xf32> to vector<2x64xf32>
    %cst_81 = arith.constant dense<0.000000e+00> : vector<2x64xf32>
    %219 = tpu.matmul %208, %14, %cst_81 {dimension_numbers = #tpu.dot_dimension_numbers<[1], [0], [0], [1], [0, 0, 1, 1], [], []>} : vector<2x16xf32>, vector<16x64xf32>, vector<2x64xf32> -> vector<2x64xf32>
    %220 = arith.addf %218, %219 : vector<2x64xf32>
    %221 = vector.extract_strided_slice %12 {offsets = [3, 0, 0], sizes = [1, 2, 64], strides = [1, 1, 1]} : vector<8x2x64xf32> to vector<1x2x64xf32>
    %222 = vector.shape_cast %221 : vector<1x2x64xf32> to vector<2x64xf32>
    %cst_82 = arith.constant dense<0.000000e+00> : vector<2x64xf32>
    %223 = tpu.matmul %210, %16, %cst_82 {dimension_numbers = #tpu.dot_dimension_numbers<[1], [0], [0], [1], [0, 0, 1, 1], [], []>} : vector<2x16xf32>, vector<16x64xf32>, vector<2x64xf32> -> vector<2x64xf32>
    %224 = arith.addf %222, %223 : vector<2x64xf32>
    %cst_83 = arith.constant 5.000000e-01 : f32
    %225 = vector.broadcast %cst_83 : f32 to vector<2x64xf32>
    %226 = arith.mulf %225, %220 : vector<2x64xf32>
    %227 = math.tanh %226 : vector<2x64xf32>
    %cst_84 = arith.constant 5.000000e-01 : f32
    %228 = vector.broadcast %cst_84 : f32 to vector<2x64xf32>
    %229 = arith.mulf %228, %227 : vector<2x64xf32>
    %cst_85 = arith.constant 5.000000e-01 : f32
    %230 = vector.broadcast %cst_85 : f32 to vector<2x64xf32>
    %231 = arith.addf %229, %230 : vector<2x64xf32>
    %232 = math.tanh %220 : vector<2x64xf32>
    %233 = vector.extract_strided_slice %231 {offsets = [0, 0], sizes = [2, 16], strides = [1, 1]} : vector<2x64xf32> to vector<2x16xf32>
    %234 = vector.extract_strided_slice %231 {offsets = [0, 16], sizes = [2, 16], strides = [1, 1]} : vector<2x64xf32> to vector<2x16xf32>
    %235 = vector.extract_strided_slice %232 {offsets = [0, 32], sizes = [2, 16], strides = [1, 1]} : vector<2x64xf32> to vector<2x16xf32>
    %236 = vector.extract_strided_slice %231 {offsets = [0, 48], sizes = [2, 16], strides = [1, 1]} : vector<2x64xf32> to vector<2x16xf32>
    %cst_86 = arith.constant 5.000000e-01 : f32
    %237 = vector.broadcast %cst_86 : f32 to vector<2x64xf32>
    %238 = arith.mulf %237, %224 : vector<2x64xf32>
    %239 = math.tanh %238 : vector<2x64xf32>
    %cst_87 = arith.constant 5.000000e-01 : f32
    %240 = vector.broadcast %cst_87 : f32 to vector<2x64xf32>
    %241 = arith.mulf %240, %239 : vector<2x64xf32>
    %cst_88 = arith.constant 5.000000e-01 : f32
    %242 = vector.broadcast %cst_88 : f32 to vector<2x64xf32>
    %243 = arith.addf %241, %242 : vector<2x64xf32>
    %244 = math.tanh %224 : vector<2x64xf32>
    %245 = vector.extract_strided_slice %243 {offsets = [0, 0], sizes = [2, 16], strides = [1, 1]} : vector<2x64xf32> to vector<2x16xf32>
    %246 = vector.extract_strided_slice %243 {offsets = [0, 16], sizes = [2, 16], strides = [1, 1]} : vector<2x64xf32> to vector<2x16xf32>
    %247 = vector.extract_strided_slice %244 {offsets = [0, 32], sizes = [2, 16], strides = [1, 1]} : vector<2x64xf32> to vector<2x16xf32>
    %248 = vector.extract_strided_slice %243 {offsets = [0, 48], sizes = [2, 16], strides = [1, 1]} : vector<2x64xf32> to vector<2x16xf32>
    %249 = arith.mulf %234, %203 : vector<2x16xf32>
    %250 = arith.mulf %233, %235 : vector<2x16xf32>
    %251 = arith.addf %249, %250 : vector<2x16xf32>
    %252 = arith.mulf %246, %206 : vector<2x16xf32>
    %253 = arith.mulf %245, %247 : vector<2x16xf32>
    %254 = arith.addf %252, %253 : vector<2x16xf32>
    %255 = math.tanh %251 : vector<2x16xf32>
    %256 = arith.mulf %236, %255 : vector<2x16xf32>
    %257 = math.tanh %254 : vector<2x16xf32>
    %258 = arith.mulf %248, %257 : vector<2x16xf32>
    %c4_89 = arith.constant 4 : index
    %c0_90 = arith.constant 0 : index
    %c0_91 = arith.constant 0 : index
    %259 = vector.load %arg9[%c4_89, %c0_90, %c0_91] : memref<11x2x64xf32, #tpu.memory_space<vmem>>, vector<1x2x16xf32>
    %260 = vector.shape_cast %259 : vector<1x2x16xf32> to vector<2x16xf32>
    %261 = vector.shape_cast %256 : vector<2x16xf32> to vector<1x2x16xf32>
    tpu.vector_store %arg9[%c4_89, %c0_90, %c0_91], %261 {strides = array<i32>} : memref<11x2x64xf32, #tpu.memory_space<vmem>>, vector<1x2x16xf32>,
    %c3_92 = arith.constant 3 : index
    %c0_93 = arith.constant 0 : index
    %c48_94 = arith.constant 48 : index
    %262 = vector.load %arg9[%c3_92, %c0_93, %c48_94] : memref<11x2x64xf32, #tpu.memory_space<vmem>>, vector<1x2x16xf32>
    %263 = vector.shape_cast %262 : vector<1x2x16xf32> to vector<2x16xf32>
    %264 = vector.shape_cast %258 : vector<2x16xf32> to vector<1x2x16xf32>
    tpu.vector_store %arg9[%c3_92, %c0_93, %c48_94], %264 {strides = array<i32>} : memref<11x2x64xf32, #tpu.memory_space<vmem>>, vector<1x2x16xf32>,
    %265 = vector.extract_strided_slice %11 {offsets = [5, 0, 0], sizes = [1, 2, 64], strides = [1, 1, 1]} : vector<8x2x64xf32> to vector<1x2x64xf32>
    %266 = vector.shape_cast %265 : vector<1x2x64xf32> to vector<2x64xf32>
    %cst_95 = arith.constant dense<0.000000e+00> : vector<2x64xf32>
    %267 = tpu.matmul %256, %14, %cst_95 {dimension_numbers = #tpu.dot_dimension_numbers<[1], [0], [0], [1], [0, 0, 1, 1], [], []>} : vector<2x16xf32>, vector<16x64xf32>, vector<2x64xf32> -> vector<2x64xf32>
    %268 = arith.addf %266, %267 : vector<2x64xf32>
    %269 = vector.extract_strided_slice %12 {offsets = [2, 0, 0], sizes = [1, 2, 64], strides = [1, 1, 1]} : vector<8x2x64xf32> to vector<1x2x64xf32>
    %270 = vector.shape_cast %269 : vector<1x2x64xf32> to vector<2x64xf32>
    %cst_96 = arith.constant dense<0.000000e+00> : vector<2x64xf32>
    %271 = tpu.matmul %258, %16, %cst_96 {dimension_numbers = #tpu.dot_dimension_numbers<[1], [0], [0], [1], [0, 0, 1, 1], [], []>} : vector<2x16xf32>, vector<16x64xf32>, vector<2x64xf32> -> vector<2x64xf32>
    %272 = arith.addf %270, %271 : vector<2x64xf32>
    %cst_97 = arith.constant 5.000000e-01 : f32
    %273 = vector.broadcast %cst_97 : f32 to vector<2x64xf32>
    %274 = arith.mulf %273, %268 : vector<2x64xf32>
    %275 = math.tanh %274 : vector<2x64xf32>
    %cst_98 = arith.constant 5.000000e-01 : f32
    %276 = vector.broadcast %cst_98 : f32 to vector<2x64xf32>
    %277 = arith.mulf %276, %275 : vector<2x64xf32>
    %cst_99 = arith.constant 5.000000e-01 : f32
    %278 = vector.broadcast %cst_99 : f32 to vector<2x64xf32>
    %279 = arith.addf %277, %278 : vector<2x64xf32>
    %280 = math.tanh %268 : vector<2x64xf32>
    %281 = vector.extract_strided_slice %279 {offsets = [0, 0], sizes = [2, 16], strides = [1, 1]} : vector<2x64xf32> to vector<2x16xf32>
    %282 = vector.extract_strided_slice %279 {offsets = [0, 16], sizes = [2, 16], strides = [1, 1]} : vector<2x64xf32> to vector<2x16xf32>
    %283 = vector.extract_strided_slice %280 {offsets = [0, 32], sizes = [2, 16], strides = [1, 1]} : vector<2x64xf32> to vector<2x16xf32>
    %284 = vector.extract_strided_slice %279 {offsets = [0, 48], sizes = [2, 16], strides = [1, 1]} : vector<2x64xf32> to vector<2x16xf32>
    %cst_100 = arith.constant 5.000000e-01 : f32
    %285 = vector.broadcast %cst_100 : f32 to vector<2x64xf32>
    %286 = arith.mulf %285, %272 : vector<2x64xf32>
    %287 = math.tanh %286 : vector<2x64xf32>
    %cst_101 = arith.constant 5.000000e-01 : f32
    %288 = vector.broadcast %cst_101 : f32 to vector<2x64xf32>
    %289 = arith.mulf %288, %287 : vector<2x64xf32>
    %cst_102 = arith.constant 5.000000e-01 : f32
    %290 = vector.broadcast %cst_102 : f32 to vector<2x64xf32>
    %291 = arith.addf %289, %290 : vector<2x64xf32>
    %292 = math.tanh %272 : vector<2x64xf32>
    %293 = vector.extract_strided_slice %291 {offsets = [0, 0], sizes = [2, 16], strides = [1, 1]} : vector<2x64xf32> to vector<2x16xf32>
    %294 = vector.extract_strided_slice %291 {offsets = [0, 16], sizes = [2, 16], strides = [1, 1]} : vector<2x64xf32> to vector<2x16xf32>
    %295 = vector.extract_strided_slice %292 {offsets = [0, 32], sizes = [2, 16], strides = [1, 1]} : vector<2x64xf32> to vector<2x16xf32>
    %296 = vector.extract_strided_slice %291 {offsets = [0, 48], sizes = [2, 16], strides = [1, 1]} : vector<2x64xf32> to vector<2x16xf32>
    %297 = arith.mulf %282, %251 : vector<2x16xf32>
    %298 = arith.mulf %281, %283 : vector<2x16xf32>
    %299 = arith.addf %297, %298 : vector<2x16xf32>
    %300 = arith.mulf %294, %254 : vector<2x16xf32>
    %301 = arith.mulf %293, %295 : vector<2x16xf32>
    %302 = arith.addf %300, %301 : vector<2x16xf32>
    %303 = math.tanh %299 : vector<2x16xf32>
    %304 = arith.mulf %284, %303 : vector<2x16xf32>
    %305 = math.tanh %302 : vector<2x16xf32>
    %306 = arith.mulf %296, %305 : vector<2x16xf32>
    %c5_103 = arith.constant 5 : index
    %c0_104 = arith.constant 0 : index
    %c0_105 = arith.constant 0 : index
    %307 = vector.load %arg9[%c5_103, %c0_104, %c0_105] : memref<11x2x64xf32, #tpu.memory_space<vmem>>, vector<1x2x16xf32>
    %308 = vector.shape_cast %307 : vector<1x2x16xf32> to vector<2x16xf32>
    %309 = vector.shape_cast %304 : vector<2x16xf32> to vector<1x2x16xf32>
    tpu.vector_store %arg9[%c5_103, %c0_104, %c0_105], %309 {strides = array<i32>} : memref<11x2x64xf32, #tpu.memory_space<vmem>>, vector<1x2x16xf32>,
    %c2_106 = arith.constant 2 : index
    %c0_107 = arith.constant 0 : index
    %c48_108 = arith.constant 48 : index
    %310 = vector.load %arg9[%c2_106, %c0_107, %c48_108] : memref<11x2x64xf32, #tpu.memory_space<vmem>>, vector<1x2x16xf32>
    %311 = vector.shape_cast %310 : vector<1x2x16xf32> to vector<2x16xf32>
    %312 = vector.shape_cast %306 : vector<2x16xf32> to vector<1x2x16xf32>
    tpu.vector_store %arg9[%c2_106, %c0_107, %c48_108], %312 {strides = array<i32>} : memref<11x2x64xf32, #tpu.memory_space<vmem>>, vector<1x2x16xf32>,
    %313 = vector.extract_strided_slice %11 {offsets = [6, 0, 0], sizes = [1, 2, 64], strides = [1, 1, 1]} : vector<8x2x64xf32> to vector<1x2x64xf32>
    %314 = vector.shape_cast %313 : vector<1x2x64xf32> to vector<2x64xf32>
    %cst_109 = arith.constant dense<0.000000e+00> : vector<2x64xf32>
    %315 = tpu.matmul %304, %14, %cst_109 {dimension_numbers = #tpu.dot_dimension_numbers<[1], [0], [0], [1], [0, 0, 1, 1], [], []>} : vector<2x16xf32>, vector<16x64xf32>, vector<2x64xf32> -> vector<2x64xf32>
    %316 = arith.addf %314, %315 : vector<2x64xf32>
    %317 = vector.extract_strided_slice %12 {offsets = [1, 0, 0], sizes = [1, 2, 64], strides = [1, 1, 1]} : vector<8x2x64xf32> to vector<1x2x64xf32>
    %318 = vector.shape_cast %317 : vector<1x2x64xf32> to vector<2x64xf32>
    %cst_110 = arith.constant dense<0.000000e+00> : vector<2x64xf32>
    %319 = tpu.matmul %306, %16, %cst_110 {dimension_numbers = #tpu.dot_dimension_numbers<[1], [0], [0], [1], [0, 0, 1, 1], [], []>} : vector<2x16xf32>, vector<16x64xf32>, vector<2x64xf32> -> vector<2x64xf32>
    %320 = arith.addf %318, %319 : vector<2x64xf32>
    %cst_111 = arith.constant 5.000000e-01 : f32
    %321 = vector.broadcast %cst_111 : f32 to vector<2x64xf32>
    %322 = arith.mulf %321, %316 : vector<2x64xf32>
    %323 = math.tanh %322 : vector<2x64xf32>
    %cst_112 = arith.constant 5.000000e-01 : f32
    %324 = vector.broadcast %cst_112 : f32 to vector<2x64xf32>
    %325 = arith.mulf %324, %323 : vector<2x64xf32>
    %cst_113 = arith.constant 5.000000e-01 : f32
    %326 = vector.broadcast %cst_113 : f32 to vector<2x64xf32>
    %327 = arith.addf %325, %326 : vector<2x64xf32>
    %328 = math.tanh %316 : vector<2x64xf32>
    %329 = vector.extract_strided_slice %327 {offsets = [0, 0], sizes = [2, 16], strides = [1, 1]} : vector<2x64xf32> to vector<2x16xf32>
    %330 = vector.extract_strided_slice %327 {offsets = [0, 16], sizes = [2, 16], strides = [1, 1]} : vector<2x64xf32> to vector<2x16xf32>
    %331 = vector.extract_strided_slice %328 {offsets = [0, 32], sizes = [2, 16], strides = [1, 1]} : vector<2x64xf32> to vector<2x16xf32>
    %332 = vector.extract_strided_slice %327 {offsets = [0, 48], sizes = [2, 16], strides = [1, 1]} : vector<2x64xf32> to vector<2x16xf32>
    %cst_114 = arith.constant 5.000000e-01 : f32
    %333 = vector.broadcast %cst_114 : f32 to vector<2x64xf32>
    %334 = arith.mulf %333, %320 : vector<2x64xf32>
    %335 = math.tanh %334 : vector<2x64xf32>
    %cst_115 = arith.constant 5.000000e-01 : f32
    %336 = vector.broadcast %cst_115 : f32 to vector<2x64xf32>
    %337 = arith.mulf %336, %335 : vector<2x64xf32>
    %cst_116 = arith.constant 5.000000e-01 : f32
    %338 = vector.broadcast %cst_116 : f32 to vector<2x64xf32>
    %339 = arith.addf %337, %338 : vector<2x64xf32>
    %340 = math.tanh %320 : vector<2x64xf32>
    %341 = vector.extract_strided_slice %339 {offsets = [0, 0], sizes = [2, 16], strides = [1, 1]} : vector<2x64xf32> to vector<2x16xf32>
    %342 = vector.extract_strided_slice %339 {offsets = [0, 16], sizes = [2, 16], strides = [1, 1]} : vector<2x64xf32> to vector<2x16xf32>
    %343 = vector.extract_strided_slice %340 {offsets = [0, 32], sizes = [2, 16], strides = [1, 1]} : vector<2x64xf32> to vector<2x16xf32>
    %344 = vector.extract_strided_slice %339 {offsets = [0, 48], sizes = [2, 16], strides = [1, 1]} : vector<2x64xf32> to vector<2x16xf32>
    %345 = arith.mulf %330, %299 : vector<2x16xf32>
    %346 = arith.mulf %329, %331 : vector<2x16xf32>
    %347 = arith.addf %345, %346 : vector<2x16xf32>
    %348 = arith.mulf %342, %302 : vector<2x16xf32>
    %349 = arith.mulf %341, %343 : vector<2x16xf32>
    %350 = arith.addf %348, %349 : vector<2x16xf32>
    %351 = math.tanh %347 : vector<2x16xf32>
    %352 = arith.mulf %332, %351 : vector<2x16xf32>
    %353 = math.tanh %350 : vector<2x16xf32>
    %354 = arith.mulf %344, %353 : vector<2x16xf32>
    %c6_117 = arith.constant 6 : index
    %c0_118 = arith.constant 0 : index
    %c0_119 = arith.constant 0 : index
    %355 = vector.load %arg9[%c6_117, %c0_118, %c0_119] : memref<11x2x64xf32, #tpu.memory_space<vmem>>, vector<1x2x16xf32>
    %356 = vector.shape_cast %355 : vector<1x2x16xf32> to vector<2x16xf32>
    %357 = vector.shape_cast %352 : vector<2x16xf32> to vector<1x2x16xf32>
    tpu.vector_store %arg9[%c6_117, %c0_118, %c0_119], %357 {strides = array<i32>} : memref<11x2x64xf32, #tpu.memory_space<vmem>>, vector<1x2x16xf32>,
    %c1_120 = arith.constant 1 : index
    %c0_121 = arith.constant 0 : index
    %c48_122 = arith.constant 48 : index
    %358 = vector.load %arg9[%c1_120, %c0_121, %c48_122] : memref<11x2x64xf32, #tpu.memory_space<vmem>>, vector<1x2x16xf32>
    %359 = vector.shape_cast %358 : vector<1x2x16xf32> to vector<2x16xf32>
    %360 = vector.shape_cast %354 : vector<2x16xf32> to vector<1x2x16xf32>
    tpu.vector_store %arg9[%c1_120, %c0_121, %c48_122], %360 {strides = array<i32>} : memref<11x2x64xf32, #tpu.memory_space<vmem>>, vector<1x2x16xf32>,
    %361 = vector.extract_strided_slice %11 {offsets = [7, 0, 0], sizes = [1, 2, 64], strides = [1, 1, 1]} : vector<8x2x64xf32> to vector<1x2x64xf32>
    %362 = vector.shape_cast %361 : vector<1x2x64xf32> to vector<2x64xf32>
    %cst_123 = arith.constant dense<0.000000e+00> : vector<2x64xf32>
    %363 = tpu.matmul %352, %14, %cst_123 {dimension_numbers = #tpu.dot_dimension_numbers<[1], [0], [0], [1], [0, 0, 1, 1], [], []>} : vector<2x16xf32>, vector<16x64xf32>, vector<2x64xf32> -> vector<2x64xf32>
    %364 = arith.addf %362, %363 : vector<2x64xf32>
    %365 = vector.extract_strided_slice %12 {offsets = [0, 0, 0], sizes = [1, 2, 64], strides = [1, 1, 1]} : vector<8x2x64xf32> to vector<1x2x64xf32>
    %366 = vector.shape_cast %365 : vector<1x2x64xf32> to vector<2x64xf32>
    %cst_124 = arith.constant dense<0.000000e+00> : vector<2x64xf32>
    %367 = tpu.matmul %354, %16, %cst_124 {dimension_numbers = #tpu.dot_dimension_numbers<[1], [0], [0], [1], [0, 0, 1, 1], [], []>} : vector<2x16xf32>, vector<16x64xf32>, vector<2x64xf32> -> vector<2x64xf32>
    %368 = arith.addf %366, %367 : vector<2x64xf32>
    %cst_125 = arith.constant 5.000000e-01 : f32
    %369 = vector.broadcast %cst_125 : f32 to vector<2x64xf32>
    %370 = arith.mulf %369, %364 : vector<2x64xf32>
    %371 = math.tanh %370 : vector<2x64xf32>
    %cst_126 = arith.constant 5.000000e-01 : f32
    %372 = vector.broadcast %cst_126 : f32 to vector<2x64xf32>
    %373 = arith.mulf %372, %371 : vector<2x64xf32>
    %cst_127 = arith.constant 5.000000e-01 : f32
    %374 = vector.broadcast %cst_127 : f32 to vector<2x64xf32>
    %375 = arith.addf %373, %374 : vector<2x64xf32>
    %376 = math.tanh %364 : vector<2x64xf32>
    %377 = vector.extract_strided_slice %375 {offsets = [0, 0], sizes = [2, 16], strides = [1, 1]} : vector<2x64xf32> to vector<2x16xf32>
    %378 = vector.extract_strided_slice %375 {offsets = [0, 16], sizes = [2, 16], strides = [1, 1]} : vector<2x64xf32> to vector<2x16xf32>
    %379 = vector.extract_strided_slice %376 {offsets = [0, 32], sizes = [2, 16], strides = [1, 1]} : vector<2x64xf32> to vector<2x16xf32>
    %380 = vector.extract_strided_slice %375 {offsets = [0, 48], sizes = [2, 16], strides = [1, 1]} : vector<2x64xf32> to vector<2x16xf32>
    %cst_128 = arith.constant 5.000000e-01 : f32
    %381 = vector.broadcast %cst_128 : f32 to vector<2x64xf32>
    %382 = arith.mulf %381, %368 : vector<2x64xf32>
    %383 = math.tanh %382 : vector<2x64xf32>
    %cst_129 = arith.constant 5.000000e-01 : f32
    %384 = vector.broadcast %cst_129 : f32 to vector<2x64xf32>
    %385 = arith.mulf %384, %383 : vector<2x64xf32>
    %cst_130 = arith.constant 5.000000e-01 : f32
    %386 = vector.broadcast %cst_130 : f32 to vector<2x64xf32>
    %387 = arith.addf %385, %386 : vector<2x64xf32>
    %388 = math.tanh %368 : vector<2x64xf32>
    %389 = vector.extract_strided_slice %387 {offsets = [0, 0], sizes = [2, 16], strides = [1, 1]} : vector<2x64xf32> to vector<2x16xf32>
    %390 = vector.extract_strided_slice %387 {offsets = [0, 16], sizes = [2, 16], strides = [1, 1]} : vector<2x64xf32> to vector<2x16xf32>
    %391 = vector.extract_strided_slice %388 {offsets = [0, 32], sizes = [2, 16], strides = [1, 1]} : vector<2x64xf32> to vector<2x16xf32>
    %392 = vector.extract_strided_slice %387 {offsets = [0, 48], sizes = [2, 16], strides = [1, 1]} : vector<2x64xf32> to vector<2x16xf32>
    %393 = arith.mulf %378, %347 : vector<2x16xf32>
    %394 = arith.mulf %377, %379 : vector<2x16xf32>
    %395 = arith.addf %393, %394 : vector<2x16xf32>
    %396 = arith.mulf %390, %350 : vector<2x16xf32>
    %397 = arith.mulf %389, %391 : vector<2x16xf32>
    %398 = arith.addf %396, %397 : vector<2x16xf32>
    %399 = math.tanh %395 : vector<2x16xf32>
    %400 = arith.mulf %380, %399 : vector<2x16xf32>
    %401 = math.tanh %398 : vector<2x16xf32>
    %402 = arith.mulf %392, %401 : vector<2x16xf32>
    %c7_131 = arith.constant 7 : index
    %c0_132 = arith.constant 0 : index
    %c0_133 = arith.constant 0 : index
    %403 = vector.load %arg9[%c7_131, %c0_132, %c0_133] : memref<11x2x64xf32, #tpu.memory_space<vmem>>, vector<1x2x16xf32>
    %404 = vector.shape_cast %403 : vector<1x2x16xf32> to vector<2x16xf32>
    %405 = vector.shape_cast %400 : vector<2x16xf32> to vector<1x2x16xf32>
    tpu.vector_store %arg9[%c7_131, %c0_132, %c0_133], %405 {strides = array<i32>} : memref<11x2x64xf32, #tpu.memory_space<vmem>>, vector<1x2x16xf32>,
    %c0_134 = arith.constant 0 : index
    %c0_135 = arith.constant 0 : index
    %c48_136 = arith.constant 48 : index
    %406 = vector.load %arg9[%c0_134, %c0_135, %c48_136] : memref<11x2x64xf32, #tpu.memory_space<vmem>>, vector<1x2x16xf32>
    %407 = vector.shape_cast %406 : vector<1x2x16xf32> to vector<2x16xf32>
    %408 = vector.shape_cast %402 : vector<2x16xf32> to vector<1x2x16xf32>
    tpu.vector_store %arg9[%c0_134, %c0_135, %c48_136], %408 {strides = array<i32>} : memref<11x2x64xf32, #tpu.memory_space<vmem>>, vector<1x2x16xf32>,
    %cst_137 = arith.constant 0.000000e+00 : f32
    %409 = vector.broadcast %cst_137 : f32 to vector<8x2x24xf32>
    %c0_138 = arith.constant 0 : index
    %c0_139 = arith.constant 0 : index
    %c0_140 = arith.constant 0 : index
    %410 = vector.load %arg9[%c0_138, %c0_139, %c0_140] : memref<11x2x64xf32, #tpu.memory_space<vmem>>, vector<8x2x64xf32>
    %c0_141 = arith.constant 0 : index
    %c0_142 = arith.constant 0 : index
    %c0_143 = arith.constant 0 : index
    %411 = vector.load %arg5[%c0_141, %c0_142, %c0_143] : memref<4x64x24xf32, #tpu.memory_space<vmem>>, vector<1x64x24xf32>
    %412 = vector.shape_cast %411 : vector<1x64x24xf32> to vector<64x24xf32>
    "tpu.trace_start"() <{level = 10 : i32, message = "pbc,cf->pbf"}> : () -> ()
    %cst_144 = arith.constant dense<0.000000e+00> : vector<8x2x24xf32>
    %413 = tpu.matmul %410, %412, %cst_144 {dimension_numbers = #tpu.dot_dimension_numbers<[2], [0], [0, 1], [1], [0, 0, 0, 1, 1, 1], [], []>} : vector<8x2x64xf32>, vector<64x24xf32>, vector<8x2x24xf32> -> vector<8x2x24xf32>
    "tpu.trace_stop"() : () -> ()
    %414 = arith.addf %409, %413 : vector<8x2x24xf32>
    %c1_145 = arith.constant 1 : index
    %c0_146 = arith.constant 0 : index
    %c0_147 = arith.constant 0 : index
    %415 = vector.load %arg9[%c1_145, %c0_146, %c0_147] : memref<11x2x64xf32, #tpu.memory_space<vmem>>, vector<8x2x64xf32>
    %c1_148 = arith.constant 1 : index
    %c0_149 = arith.constant 0 : index
    %c0_150 = arith.constant 0 : index
    %416 = vector.load %arg5[%c1_148, %c0_149, %c0_150] : memref<4x64x24xf32, #tpu.memory_space<vmem>>, vector<1x64x24xf32>
    %417 = vector.shape_cast %416 : vector<1x64x24xf32> to vector<64x24xf32>
    "tpu.trace_start"() <{level = 10 : i32, message = "pbc,cf->pbf"}> : () -> ()
    %cst_151 = arith.constant dense<0.000000e+00> : vector<8x2x24xf32>
    %418 = tpu.matmul %415, %417, %cst_151 {dimension_numbers = #tpu.dot_dimension_numbers<[2], [0], [0, 1], [1], [0, 0, 0, 1, 1, 1], [], []>} : vector<8x2x64xf32>, vector<64x24xf32>, vector<8x2x24xf32> -> vector<8x2x24xf32>
    "tpu.trace_stop"() : () -> ()
    %419 = arith.addf %414, %418 : vector<8x2x24xf32>
    %c2_152 = arith.constant 2 : index
    %c0_153 = arith.constant 0 : index
    %c0_154 = arith.constant 0 : index
    %420 = vector.load %arg9[%c2_152, %c0_153, %c0_154] : memref<11x2x64xf32, #tpu.memory_space<vmem>>, vector<8x2x64xf32>
    %c2_155 = arith.constant 2 : index
    %c0_156 = arith.constant 0 : index
    %c0_157 = arith.constant 0 : index
    %421 = vector.load %arg5[%c2_155, %c0_156, %c0_157] : memref<4x64x24xf32, #tpu.memory_space<vmem>>, vector<1x64x24xf32>
    %422 = vector.shape_cast %421 : vector<1x64x24xf32> to vector<64x24xf32>
    "tpu.trace_start"() <{level = 10 : i32, message = "pbc,cf->pbf"}> : () -> ()
    %cst_158 = arith.constant dense<0.000000e+00> : vector<8x2x24xf32>
    %423 = tpu.matmul %420, %422, %cst_158 {dimension_numbers = #tpu.dot_dimension_numbers<[2], [0], [0, 1], [1], [0, 0, 0, 1, 1, 1], [], []>} : vector<8x2x64xf32>, vector<64x24xf32>, vector<8x2x24xf32> -> vector<8x2x24xf32>
    "tpu.trace_stop"() : () -> ()
    %424 = arith.addf %419, %423 : vector<8x2x24xf32>
    %c3_159 = arith.constant 3 : index
    %c0_160 = arith.constant 0 : index
    %c0_161 = arith.constant 0 : index
    %425 = vector.load %arg9[%c3_159, %c0_160, %c0_161] : memref<11x2x64xf32, #tpu.memory_space<vmem>>, vector<8x2x64xf32>
    %c3_162 = arith.constant 3 : index
    %c0_163 = arith.constant 0 : index
    %c0_164 = arith.constant 0 : index
    %426 = vector.load %arg5[%c3_162, %c0_163, %c0_164] : memref<4x64x24xf32, #tpu.memory_space<vmem>>, vector<1x64x24xf32>
    %427 = vector.shape_cast %426 : vector<1x64x24xf32> to vector<64x24xf32>
    "tpu.trace_start"() <{level = 10 : i32, message = "pbc,cf->pbf"}> : () -> ()
    %cst_165 = arith.constant dense<0.000000e+00> : vector<8x2x24xf32>
    %428 = tpu.matmul %425, %427, %cst_165 {dimension_numbers = #tpu.dot_dimension_numbers<[2], [0], [0, 1], [1], [0, 0, 0, 1, 1, 1], [], []>} : vector<8x2x64xf32>, vector<64x24xf32>, vector<8x2x24xf32> -> vector<8x2x24xf32>
    "tpu.trace_stop"() : () -> ()
    %429 = arith.addf %424, %428 : vector<8x2x24xf32>
    %c0_166 = arith.constant 0 : index
    %c0_167 = arith.constant 0 : index
    %430 = vector.load %arg6[%c0_166, %c0_167] : memref<2x24xf32, #tpu.memory_space<vmem>>, vector<1x24xf32>
    %c1_168 = arith.constant 1 : index
    %c0_169 = arith.constant 0 : index
    %431 = vector.load %arg6[%c1_168, %c0_169] : memref<2x24xf32, #tpu.memory_space<vmem>>, vector<1x24xf32>
    %432 = vector.shape_cast %430 : vector<1x24xf32> to vector<1x1x24xf32>
    %433 = vector.broadcast %432 : vector<1x1x24xf32> to vector<8x2x24xf32>
    %434 = arith.addf %429, %433 : vector<8x2x24xf32>
    %cst_170 = arith.constant 0.000000e+00 : f32
    %435 = vector.broadcast %cst_170 : f32 to vector<8x2x24xf32>
    %436 = arith.maximumf %434, %435 : vector<8x2x24xf32>
    %437 = tpu.iota {dimensions = array<i32: 0>} : vector<8x2x24xi32>
    %438 = arith.sitofp %437 : vector<8x2x24xi32> to vector<8x2x24xf32>
    %439 = vector.shape_cast %431 : vector<1x24xf32> to vector<1x1x24xf32>
    %440 = vector.broadcast %439 : vector<1x1x24xf32> to vector<8x2x24xf32>
    %441 = arith.cmpf ole, %438, %440 : vector<8x2x24xf32>
    %cst_171 = arith.constant 0.000000e+00 : f32
    %442 = vector.broadcast %cst_171 : f32 to vector<8x2x24xf32>
    %443 = arith.select %441, %436, %442 : vector<8x2x24xi1>, vector<8x2x24xf32>
    %cst_172 = arith.constant dense<0xFF800000> : vector<2x24xf32>
    %444 = vector.multi_reduction <maximumf>, %443, %cst_172 [0] : vector<8x2x24xf32> to vector<2x24xf32>
    %c0_173 = arith.constant 0 : index
    %c0_174 = arith.constant 0 : index
    %445 = vector.load %arg7[%c0_173, %c0_174] : memref<25x4xf32, #tpu.memory_space<vmem>>, vector<24x4xf32>
    %c24 = arith.constant 24 : index
    %c0_175 = arith.constant 0 : index
    %446 = vector.load %arg7[%c24, %c0_175] : memref<25x4xf32, #tpu.memory_space<vmem>>, vector<1x4xf32>
    %cst_176 = arith.constant dense<0.000000e+00> : vector<2x4xf32>
    %447 = tpu.matmul %444, %445, %cst_176 {dimension_numbers = #tpu.dot_dimension_numbers<[1], [0], [0], [1], [0, 0, 1, 1], [], []>} : vector<2x24xf32>, vector<24x4xf32>, vector<2x4xf32> -> vector<2x4xf32>
    %448 = vector.broadcast %446 : vector<1x4xf32> to vector<2x4xf32>
    %449 = arith.addf %447, %448 : vector<2x4xf32>
    %cst_177 = arith.constant dense<0xFF800000> : vector<2xf32>
    %450 = vector.multi_reduction <maximumf>, %449, %cst_177 [1] : vector<2x4xf32> to vector<2xf32>
    %451 = vector.shape_cast %450 : vector<2xf32> to vector<2x1xf32>
    %452 = vector.broadcast %451 : vector<2x1xf32> to vector<2x4xf32>
    %453 = arith.subf %449, %452 : vector<2x4xf32>
    %454 = math.exp %453 : vector<2x4xf32>
    %cst_178 = arith.constant dense<0.000000e+00> : vector<2xf32>
    %455 = vector.multi_reduction <add>, %454, %cst_178 [1] : vector<2x4xf32> to vector<2xf32>
    %456 = vector.shape_cast %455 : vector<2xf32> to vector<2x1xf32>
    %457 = vector.broadcast %456 : vector<2x1xf32> to vector<2x4xf32>
    %458 = arith.divf %454, %457 : vector<2x4xf32>
    %c0_179 = arith.constant 0 : index
    %c0_180 = arith.constant 0 : index
    %459 = vector.load %arg8[%c0_179, %c0_180] : memref<2x4xf32, #tpu.memory_space<vmem>>, vector<2x4xf32>
    tpu.vector_store %arg8[%c0_179, %c0_180], %458 {strides = array<i32>} : memref<2x4xf32, #tpu.memory_space<vmem>>, vector<2x4xf32>,
    return
  }
}

</mosaic_0001>

<bundles_post_ra>
// kernel: bert_lstm_cnn_forward.1
= control target key start
LH: loop header
LB: loop body
LE: loop exit
PB: predicated region body
PF: predicated region fallthrough
CT: control target
= control target key end

     0   :  { %v122_v3 = vlaneseq  ;;  %v3655_v4 = vmov 0.0|0.0   ;;  %vm3656_vm0 = vmmov 0   ;;  %v3657_v7 = vmov 0.0   ;;  %s4378_s0 = inlined_call_operand.vmem [shape: f32[8,2,32], index: 0, kind: input, shape index: {}]   ;;  %s4379_s1 = inlined_call_operand.vmem [shape: f32[32,128], index: 1, kind: input, shape index: {}]   ;;  %s4380_s2 = inlined_call_operand.vmem [shape: f32[1,128], index: 2, kind: input, shape index: {}]   ;;  %s4381_s3 = inlined_call_operand.vmem [shape: f32[2,16,64], index: 3, kind: input, shape index: {}]   ;;  %s4382_s4 = inlined_call_operand.vmem [shape: f32[4,2,16], index: 4, kind: input, shape index: {}]   ;;  %s4383_s5 = inlined_call_operand.vmem [shape: f32[4,64,24], index: 5, kind: input, shape index: {}]   ;;  %s4384_s6 = inlined_call_operand.vmem [shape: f32[2,24], index: 6, kind: input, shape index: {}]   ;;  %s4385_s7 = inlined_call_operand.vmem [shape: f32[25,4], index: 7, kind: input, shape index: {}]   ;;  %s4386_s8 = inlined_call_operand.hbm [shape: f32[2,4], index: 8, kind: output, shape index: {}]  }
   0x1   :  { %v285_v0 = vld [vmem:[%s4381_s3] sm:$0xff]  ;;  %v286_v1 = vld [vmem:[%s4381_s3 + $0x8] sm:$0xff]  ;;  %3404 = vmatprep.subr.bf16.mxu1 %v3655_v4  ;;  %3203 = vmatprep.mubr.msk.f32.mxu1 %vm3656_vm0, %v3657_v7  ;;  %v3023_v9 = vld [vmem:[%s4381_s3 + $0x10] sm:$0xff]  ;;  %vm297_vm1 = vcmask 130048   ;;  %v3658_v18 = vmov 1983009808  }
   0x2   :  { %v99_v2 = vld [vmem:[%s4379_s1] sm:$0xff]  ;;  %v3720_v5 = vpack.c.bf16 %v286_v1, %v285_v0  ;;  %v100_v6 = vld [vmem:[%s4379_s1 + $0x8] sm:$0xff]  ;;  %v3024_v11 = vld [vmem:[%s4381_s3 + $0x18] sm:$0xff]  ;;  %v120_v19 = vunpack.c.l.s4 %v3658_v18  ;;  %v123_v20 = vshrl.u32 %v122_v3, 7 }
   0x3   :  { %v290_v8 = vld [vmem:[%s4382_s4] sm:$0x3]  ;;  %v3396_v10 = vpack.c.bf16 %v100_v6, %v99_v2  ;;  %v101_v12 = vld [vmem:[%s4379_s1 + $0x10] sm:$0xff]  ;;  %v102_v13 = vld [vmem:[%s4379_s1 + $0x18] sm:$0xff]  ;;  %v3743_v14 = vpack.c.bf16 %v3024_v11, %v3023_v9 }
   0x4   :  { %3406 = vmatpush3.bf16.msra.mxu1 %v3720_v5  ;;  %v3400_v15 = vpack.c.bf16 %v102_v13, %v101_v12  ;;  %v91_v16 = vld [vmem:[%s4378_s0] sm:$0x3]  ;;  %v92_v17 = vld [vmem:[%s4378_s0 + $0x2] sm:$0x3]  ;;  %v93_v21 = vld [vmem:[%s4378_s0 + $0x4] sm:$0x3]  ;;  %v121_v26 = vunpack.c.0.s8 %v120_v19 }
   0x5   :  { %3397 = vmatprep.subr.bf16.mxu0 %v3396_v10  ;;  %3407 = vmatprep.subr.bf16.mxu1 %v3655_v4  ;;  %v94_v22 = vld [vmem:[%s4378_s0 + $0x6] sm:$0x3]  ;;  %v95_v23 = vld [vmem:[%s4378_s0 + $0x8] sm:$0x3]  ;;  %v117_v24 = vcombine.low %v91_v16, %v92_v17  ;;  %v96_v27 = vld [vmem:[%s4378_s0 + $0xa] sm:$0x3] }
   0x6   :  { %3399 = vmatpush3.bf16.msra.mxu0 %v3396_v10  ;;  %v118_v25 = vcombine.low %v93_v21, %v94_v22  ;;  %v97_v28 = vld [vmem:[%s4378_s0 + $0xc] sm:$0x3]  ;;  %v98_v29 = vld [vmem:[%s4378_s0 + $0xe] sm:$0x3]  ;;  %v134_v30 = vcombine.low %v95_v23, %v96_v27 }
   0x7   :  { %3204 = vmatmul.mubr.msk.f32.vlgmr.msra.gmra.mrb[0].mxu1 %vm297_vm1, %v290_v8  ;;  %3401 = vmatprep.subr.bf16.mxu0 %v3400_v15  ;;  %v135_v31 = vcombine.low %v97_v28, %v98_v29 }
   0x8   :  { %13 = vsyncpa [#allocation4], 0  ;;  %3409 = vmatpush3.bf16.msra.mxu1 %v3743_v14  ;;  %3210 = vmatprep.mubr.msk.f32.mxu1 %vm3656_vm0, %v3657_v7  ;;  %v3025_v32 = vld [vmem:[%s4382_s4 + $0x2] sm:$0x3]  ;;  %v3777_v33 = vsub.s32 %v121_v26, %v123_v20  ;;  %vm161_vm2 = vcmask 261120   ;;  %s3659_s19 = smov 64  }
   0x9   :  { %3410 = vmatprep.subr.bf16.mxu1 %v3655_v4  ;;  %v3020_v40 = vld [vmem:[%s4380_s2] ss:$0 sm:$0xff]  ;;  %s3660_s2 = smov 96   ;;  %s3661_s22 = smov 16   ;;  %vm30_vm3 = vcmask 517120   ;;  %vm82_vm4 = vcmask 386176  }
   0xa   :  { %3403 = vmatpush3.bf16.msra.mxu0 %v3400_v15  ;;  %v125_v34 = vrot.slane %v117_v24, %v3777_v33  ;;  %v132_v35 = vrot.slane %v118_v25, %v3777_v33  ;;  %v142_v36 = vrot.slane %v134_v30, %v3777_v33  ;;  %v149_v37 = vrot.slane %v135_v31, %v3777_v33  ;;  %v3030_v0 = vld.sshfl [vmem:[%s4382_s4 + $0x4] sm:$0x3 pattern:$0x76325410]  ;;  %s3662_s25 = smov 80   ;;  %s3664_s14 = smov [#allocation3]  }
   0xb   :  { %3211 = vmatmul.mubr.msk.f32.vlgmr.msra.gmra.mrb[2].mxu1 %vm297_vm1, %v3025_v32  ;;  %3416 = vmatprep.subr.bf16.mxu0 %v3655_v4  ;;  %v151_v41 = vcombine.low %v3020_v40, %v3020_v40  ;;  %v3031_v3 = vld.sshfl [vmem:[%s4382_s4 + $0x6] sm:$0x3 pattern:$0x76325410]  ;;  %s3663_s4 = smov 32   ;;  %vm534_vm5 = vcmask 123904  }
   0xc   :  { %v133_v38 = vcombine.low %v125_v34, %v132_v35  ;;  %v150_v39 = vcombine.low %v142_v36, %v149_v37  ;;  %3412 = vmatpush3.bf16.msra.mxu1 %v3720_v5  ;;  %3217 = vmatprep.mubr.msk.f32.mxu1 %vm3656_vm0, %v3657_v7  ;;  %32 = vst.msk [vmem:[#allocation2 + $0x2] sm:$0x3] %vm30_vm3, %v3657_v7  ;;  %31 = vst.msk [vmem:[#allocation2] sm:$0x3] %vm30_vm3, %v3657_v7  ;;  %vm548_vm6 = vcmask 517504   ;;  %vm2220_vm7 = vcmask 523264  }
   0xd   :  { %3413 = vmatprep.subr.bf16.mxu1 %v3655_v4  ;;  %v158_v44 = vrot.slane %v151_v41, %v3777_v33  ;;  %33 = vst.msk [vmem:[#allocation2 + $0x4] sm:$0x3] %vm30_vm3, %v3657_v7  ;;  %34 = vst.msk [vmem:[#allocation2 + $0x6] sm:$0x3] %vm30_vm3, %v3657_v7  ;;  %vm2895_vm9 = vcmask 189440   ;;  %s3012_s15 = sshll.u32 %s3664_s14, 4  ;;  %s3013_s15 = int_to_ptr.vmem [resolvable:$true] %s3012_s15 }
   0xe   :  { %3196 = vmatprep.mubr.msk.f32.mxu0 %vm161_vm2, %v133_v38  ;;  %35 = vst.msk [vmem:[#allocation2 + $0x8] sm:$0x3] %vm30_vm3, %v3657_v7  ;;  %36 = vst.msk [vmem:[#allocation2 + $0xa] sm:$0x3] %vm30_vm3, %v3657_v7  ;;  %p3636_p1 = scmp.lt.s32.totalorder %s3013_s15, %s3013_s15 }
   0xf   :  { %3197 = vmatmul.mubr.msk.f32.vlgmr.msra.gmra.mrb[0].mxu0 %vm161_vm2, %v150_v39  ;;  %v159_v48 = vcombine.low %v158_v44, %v158_v44  ;;  %37 = vst.msk [vmem:[#allocation2 + $0xc] sm:$0x3] %vm30_vm3, %v3657_v7  ;;  %38 = vst.msk [vmem:[#allocation2 + $0xe] sm:$0x3] %vm30_vm3, %v3657_v7  ;;  %vm2993_vm2 = vcmask 25600  }
  0x10   :  { %3418 = vmatpush3.bf16.msra.mxu0 %v3720_v5  ;;  %3231 = vmatprep.mubr.msk.f32.mxu0 %vm3656_vm0, %v3657_v7  ;;  %39 = vst.msk [vmem:[#allocation2 + $0x10] sm:$0x3] %vm30_vm3, %v3657_v7  ;;  %40 = vst.msk [vmem:[#allocation2 + $0x12] sm:$0x3] %vm30_vm3, %v3657_v7 }
  0x11   :  { %3422 = vmatprep.subr.bf16.mxu0 %v3655_v4  ;;  %41 = vst.msk [vmem:[#allocation2 + $0x14] sm:$0x3] %vm30_vm3, %v3657_v7 }
  0xda   :  { %v367_v42 = vpop.f32.mrb[0].mxu1 }
  0xdb   :  { %v3205_v43 = vpop.f32.mrb[1].mxu1 }
  0xde   :  { %v441_v45 = vpop.f32.mrb[2].mxu1 }
  0xdf   :  { %v452_v46 = vrot.slane %v441_v45, %v3777_v33  ;;  %v3212_v47 = vpop.f32.mrb[3].mxu1 }
  0xe1   :  { %453 = vrot.lane.b32.xlu0 %v452_v46, %s3659_s19 }
  0xe2   :  { %v3198_v49 = vpop.f32.mrb[0].mxu0 }
  0xe3   :  { %v3800_v50 = vadd.f32 %v3198_v49, %v159_v48  ;;  %v232_v51 = vpop.f32.mrb[1].mxu0 }
  0xe4   :  { %v3802_v52 = vadd.f32 %v232_v51, %v159_v48 }
  0xe5   :  { %v260_v56 = vcombine.high %v3800_v50, %v3800_v50 }
  0xe6   :  { %v3806_v53 = vrot.slane %v3802_v52, %v3777_v33 }
  0xe7   :  { %v3813_v57 = vrot.slane %v260_v56, %v3777_v33 }
  0xe8   :  { %v371_v54 = vadd.f32 %v367_v42, %v3806_v53 }
  0xe9   :  { %v3817_v58 = vcombine.high %v3813_v57, %v3813_v57 }
  0xea   :  { %3531 = vtanh.f32 %v371_v54  ;;  %v457_v59 = vmul.f32 0.5, %v371_v54  ;;  %v3863_v54 = vcombine.high %v3806_v53, %v3806_v53 }
  0xec   :  { %3533 = vtanh.f32 %v457_v59 }
  0xf4   :  { %v3532_v55 = vpop.eup %3531 }
  0xf5   :  { %480 = vrot.lane.b32.xlu0 %v3532_v55, %s3660_s2 }
  0xf6   :  { %v3534_v62 = vpop.eup %3533 }
  0xf7   :  { %v459_v1 = vmul.f32 0.5, %v3534_v62 }
  0xf9   :  { %v460_v2 = vadd.f32 0.5, %v459_v1 }
 0x153   :  { %v454_v60 = vpop.permute.xlu0 %453 }
 0x154   :  { %v456_v61 = vadd.f32 %v454_v60, %v3817_v58 }
 0x156   :  { %3535 = vtanh.f32 %v456_v61  ;;  %v462_v9 = vmul.f32 0.5, %v456_v61 }
 0x158   :  { %3537 = vtanh.f32 %v462_v9 }
 0x160   :  { %v3536_v63 = vpop.eup %3535 }
 0x161   :  { %502 = vrot.lane.b32.xlu1 %v3536_v63, %s3660_s2 }
 0x162   :  { %v3538_v10 = vpop.eup %3537 }
 0x163   :  { %v464_v11 = vmul.f32 0.5, %v3538_v10 }
 0x165   :  { %475 = vrot.lane.b32.xlu1 %v3030_v0, %s3661_s22  ;;  %v465_v12 = vadd.f32 0.5, %v464_v11 }
 0x167   :  { %v481_v6 = vpop.permute.xlu0 %480 }
 0x168   :  { %v483_v8 = vmul.f32 %v481_v6, %v460_v2 }
 0x169   :  { %497 = vrot.lane.b32.xlu1 %v3031_v3, %s3662_s25 }
 0x16a   :  { %485 = vrot.lane.b32.xlu0 %v483_v8, %s3661_s22 }
 0x1d3   :  { %v503_v13 = vpop.permute.xlu1 %502 }
 0x1d4   :  { %v505_v15 = vmul.f32 %v503_v13, %v465_v12 }
 0x1d6   :  { %507 = vrot.lane.b32.xlu0 %v505_v15, %s3661_s22 }
 0x1d7   :  { %v476_v16 = vpop.permute.xlu1 %475 }
 0x1d8   :  { %v478_v17 = vmul.f32 %v476_v16, %v460_v2 }
 0x1db   :  { %v498_v21 = vpop.permute.xlu1 %497 }
 0x1dc   :  { %v486_v18 = vpop.permute.xlu0 %485  ;;  %v500_v22 = vmul.f32 %v498_v21, %v465_v12 }
 0x1dd   :  { %v3831_v19 = vadd.f32 %v486_v18, %v478_v17 }
 0x1df   :  { %3539 = vtanh.f32 %v3831_v19 }
 0x1e9   :  { %v3540_v20 = vpop.eup %3539 }
 0x1ea   :  { %513 = vrot.lane.b32.xlu1 %v3540_v20, %s3663_s4 }
 0x248   :  { %v508_v23 = vpop.permute.xlu0 %507 }
 0x249   :  { %v510_v24 = vadd.f32 %v508_v23, %v500_v22  ;;  %v3895_v22 = vrot.slane %v3800_v50, %v3777_v33 }
 0x24b   :  { %3541 = vtanh.f32 %v510_v24  ;;  %v3899_v23 = vcombine.high %v3895_v22, %v3895_v22 }
 0x255   :  { %v3542_v25 = vpop.eup %3541 }
 0x256   :  { %519 = vrot.lane.b32.xlu0 %v3542_v25, %s3663_s4 }
 0x25c   :  { %v514_v26 = vpop.permute.xlu1 %513 }
 0x25d   :  { %v516_v27 = vmul.f32 %v514_v26, %v460_v2 }
 0x25f   :  { %v530_v28 = vrot.slane %v516_v27, %v3777_v33 }
 0x261   :  { %531 = vrot.lane.b32.xlu1 %v530_v28, %s3662_s25 }
 0x2c8   :  { %v520_v29 = vpop.permute.xlu0 %519 }
 0x2c9   :  { %v522_v30 = vmul.f32 %v520_v29, %v465_v12 }
 0x2cb   :  { %v3839_v31 = vrot.slane %v522_v30, %v3777_v33 }
 0x2cd   :  { %623 = vrot.lane.b32.xlu0 %v3839_v31, %s3661_s22 }
 0x2d3   :  { %v3843_v32 = vpop.permute.xlu1 %531 }
 0x2d4   :  { %3218 = vmatmul.mubr.msk.f32.vlgmr.msra.gmra.mrb[4].mxu1 %vm297_vm1, %v3843_v32 }
 0x2d5   :  { %3415 = vmatpush3.bf16.msra.mxu1 %v3743_v14  ;;  %3224 = vmatprep.mubr.msk.f32.mxu1 %vm3656_vm0, %v3657_v7 }
 0x2d6   :  { %3419 = vmatprep.subr.bf16.mxu1 %v3655_v4 }
 0x33f   :  { %v624_v34 = vpop.permute.xlu0 %623 }
 0x340   :  { %3225 = vmatmul.mubr.msk.f32.vlgmr.msra.gmra.mrb[6].mxu1 %vm297_vm1, %v624_v34 }
 0x341   :  { %3421 = vmatpush3.bf16.msra.mxu1 %v3743_v14  ;;  %3238 = vmatprep.mubr.msk.f32.mxu1 %vm3656_vm0, %v3657_v7 }
 0x342   :  { %3425 = vmatprep.subr.bf16.mxu1 %v3655_v4 }
 0x3a7   :  { %v618_v35 = vpop.f32.mrb[4].mxu1 }
 0x3a8   :  { %v3219_v36 = vpop.f32.mrb[5].mxu1  ;;  %v622_v56 = vadd.f32 %v618_v35, %v3863_v54 }
 0x3aa   :  { %v709_v61 = vmul.f32 0.5, %v622_v56 }
 0x413   :  { %v693_v37 = vpop.f32.mrb[6].mxu1 }
 0x414   :  { %v704_v38 = vrot.slane %v693_v37, %v3777_v33  ;;  %v3226_v39 = vpop.f32.mrb[7].mxu1  ;;  %v243_v37 = vcombine.high %v3802_v52, %v3802_v52 }
 0x416   :  { %705 = vrot.lane.b32.xlu1 %v704_v38, %s3659_s19 }
 0x488   :  { %v706_v40 = vpop.permute.xlu1 %705 }
 0x489   :  { %v708_v41 = vadd.f32 %v706_v40, %v3813_v57  ;;  %v3907_v40 = vrot.slane %v243_v37, %v3777_v33 }
 0x48b   :  { %3543 = vtanh.f32 %v708_v41  ;;  %v714_v43 = vmul.f32 0.5, %v708_v41 }
 0x48d   :  { %3545 = vtanh.f32 %v714_v43 }
 0x495   :  { %v3544_v42 = vpop.eup %3543 }
 0x496   :  { %732 = vrot.lane.b32.xlu0 %v3544_v42, %s3660_s2 }
 0x497   :  { %v3546_v44 = vpop.eup %3545 }
 0x498   :  { %v716_v45 = vmul.f32 0.5, %v3546_v44 }
 0x49a   :  { %v717_v46 = vadd.f32 0.5, %v716_v45 }
 0x49c   :  { %v730_v49 = vmul.f32 %v717_v46, %v510_v24 }
 0x508   :  { %v733_v47 = vpop.permute.xlu0 %732 }
 0x509   :  { %v735_v48 = vmul.f32 %v733_v47, %v717_v46 }
 0x50b   :  { %737 = vrot.lane.b32.xlu1 %v735_v48, %s3661_s22 }
 0x57d   :  { %v738_v51 = vpop.permute.xlu1 %737 }
 0x57e   :  { %v740_v55 = vadd.f32 %v738_v51, %v730_v49 }
 0x580   :  { %3547 = vtanh.f32 %v740_v55 }
 0x581   :  { %3549 = vtanh.f32 %v622_v56 }
 0x582   :  { %3551 = vtanh.f32 %v709_v61 }
 0x58a   :  { %v3548_v59 = vpop.eup %3547 }
 0x58b   :  { %749 = vrot.lane.b32.xlu0 %v3548_v59, %s3663_s4  ;;  %v3550_v60 = vpop.eup %3549 }
 0x58c   :  { %v3552_v62 = vpop.eup %3551 }
 0x58d   :  { %v711_v1 = vmul.f32 0.5, %v3552_v62 }
 0x58f   :  { %721 = vrot.lane.b32.xlu0 %v3550_v60, %s3660_s2  ;;  %v712_v6 = vadd.f32 0.5, %v711_v1 }
 0x591   :  { %v719_v10 = vmul.f32 %v712_v6, %v3831_v19 }
 0x5fd   :  { %v750_v63 = vpop.permute.xlu0 %749 }
 0x5fe   :  { %v752_v0 = vmul.f32 %v750_v63, %v717_v46 }
 0x600   :  { %v3869_v2 = vrot.slane %v752_v0, %v3777_v33 }
 0x601   :  { %v722_v3 = vpop.permute.xlu0 %721 }
 0x602   :  { %852 = vrot.lane.b32.xlu1 %v3869_v2, %s3661_s22  ;;  %v724_v8 = vmul.f32 %v722_v3, %v712_v6 }
 0x606   :  { %726 = vrot.lane.b32.xlu1 %v724_v8, %s3661_s22 }
 0x674   :  { %v853_v9 = vpop.permute.xlu1 %852 }
 0x675   :  { %3239 = vmatmul.mubr.msk.f32.vlgmr.msra.gmra.mrb[8].mxu1 %vm297_vm1, %v853_v9 }
 0x676   :  { %3427 = vmatpush3.bf16.msra.mxu1 %v3743_v14  ;;  %3252 = vmatprep.mubr.msk.f32.mxu1 %vm3656_vm0, %v3657_v7 }
 0x677   :  { %3431 = vmatprep.subr.bf16.mxu1 %v3655_v4 }
 0x678   :  { %v727_v11 = vpop.permute.xlu1 %726 }
 0x679   :  { %v729_v12 = vadd.f32 %v727_v11, %v719_v10 }
 0x67b   :  { %3553 = vtanh.f32 %v729_v12 }
 0x685   :  { %v3554_v13 = vpop.eup %3553 }
 0x686   :  { %743 = vrot.lane.b32.xlu1 %v3554_v13, %s3663_s4 }
 0x6f8   :  { %v744_v15 = vpop.permute.xlu1 %743 }
 0x6f9   :  { %v746_v16 = vmul.f32 %v744_v15, %v712_v6 }
 0x6fb   :  { %v760_v17 = vrot.slane %v746_v16, %v3777_v33 }
 0x6fd   :  { %761 = vrot.lane.b32.xlu1 %v760_v17, %s3662_s25 }
 0x748   :  { %v922_v18 = vpop.f32.mrb[8].mxu1 }
 0x749   :  { %v933_v20 = vrot.slane %v922_v18, %v3777_v33  ;;  %v3240_v21 = vpop.f32.mrb[9].mxu1 }
 0x74b   :  { %934 = vrot.lane.b32.xlu0 %v933_v20, %s3659_s19 }
 0x76f   :  { %v3885_v19 = vpop.permute.xlu1 %761 }
 0x770   :  { %3232 = vmatmul.mubr.msk.f32.vlgmr.msra.gmra.mrb[2].mxu0 %vm297_vm1, %v3885_v19 }
 0x771   :  { %3424 = vmatpush3.bf16.msra.mxu0 %v3720_v5  ;;  %3245 = vmatprep.mubr.msk.f32.mxu0 %vm3656_vm0, %v3657_v7 }
 0x772   :  { %3428 = vmatprep.subr.bf16.mxu0 %v3655_v4 }
 0x7bd   :  { %v935_v24 = vpop.permute.xlu0 %934 }
 0x7be   :  { %v937_v25 = vadd.f32 %v935_v24, %v3899_v23 }
 0x7c0   :  { %3555 = vtanh.f32 %v937_v25  ;;  %v943_v27 = vmul.f32 0.5, %v937_v25 }
 0x7c2   :  { %3557 = vtanh.f32 %v943_v27 }
 0x7ca   :  { %v3556_v26 = vpop.eup %3555 }
 0x7cb   :  { %961 = vrot.lane.b32.xlu0 %v3556_v26, %s3660_s2 }
 0x7cc   :  { %v3558_v28 = vpop.eup %3557 }
 0x7cd   :  { %v945_v29 = vmul.f32 0.5, %v3558_v28  ;;  %v259_v28 = vcombine.high %v3907_v40, %v3907_v40 }
 0x7cf   :  { %v946_v30 = vadd.f32 0.5, %v945_v29 }
 0x7d1   :  { %v959_v38 = vmul.f32 %v946_v30, %v740_v55 }
 0x83d   :  { %v962_v34 = vpop.permute.xlu0 %961 }
 0x83e   :  { %v964_v35 = vmul.f32 %v962_v34, %v946_v30 }
 0x840   :  { %966 = vrot.lane.b32.xlu0 %v964_v35, %s3661_s22 }
 0x843   :  { %v847_v50 = vpop.f32.mrb[2].mxu0 }
 0x844   :  { %v3233_v36 = vpop.f32.mrb[3].mxu0  ;;  %v851_v42 = vadd.f32 %v847_v50, %v3907_v40 }
 0x846   :  { %v938_v45 = vmul.f32 0.5, %v851_v42 }
 0x8b2   :  { %v967_v39 = vpop.permute.xlu0 %966 }
 0x8b3   :  { %v969_v41 = vadd.f32 %v967_v39, %v959_v38 }
 0x8b5   :  { %3559 = vtanh.f32 %v969_v41 }
 0x8b6   :  { %3561 = vtanh.f32 %v851_v42 }
 0x8b7   :  { %3563 = vtanh.f32 %v938_v45 }
 0x8bf   :  { %v3560_v43 = vpop.eup %3559 }
 0x8c0   :  { %978 = vrot.lane.b32.xlu1 %v3560_v43, %s3663_s4  ;;  %v3562_v44 = vpop.eup %3561 }
 0x8c1   :  { %v3564_v46 = vpop.eup %3563 }
 0x8c2   :  { %v940_v48 = vmul.f32 0.5, %v3564_v46 }
 0x8c4   :  { %950 = vrot.lane.b32.xlu1 %v3562_v44, %s3660_s2  ;;  %v941_v55 = vadd.f32 0.5, %v940_v48 }
 0x8c6   :  { %v948_v60 = vmul.f32 %v941_v55, %v729_v12 }
 0x932   :  { %v979_v52 = vpop.permute.xlu1 %978 }
 0x933   :  { %v981_v47 = vmul.f32 %v979_v52, %v946_v30 }
 0x935   :  { %v3913_v49 = vrot.slane %v981_v47, %v3777_v33 }
 0x936   :  { %v951_v51 = vpop.permute.xlu1 %950 }
 0x937   :  { %1081 = vrot.lane.b32.xlu0 %v3913_v49, %s3661_s22  ;;  %v953_v56 = vmul.f32 %v951_v51, %v941_v55 }
 0x93b   :  { %955 = vrot.lane.b32.xlu0 %v953_v56, %s3661_s22 }
 0x9a9   :  { %v1082_v59 = vpop.permute.xlu0 %1081 }
 0x9aa   :  { %3253 = vmatmul.mubr.msk.f32.vlgmr.msra.gmra.mrb[10].mxu1 %vm297_vm1, %v1082_v59 }
 0x9ab   :  { %3433 = vmatpush3.bf16.msra.mxu1 %v3743_v14  ;;  %3266 = vmatprep.mubr.msk.f32.mxu1 %vm3656_vm0, %v3657_v7 }
 0x9ac   :  { %3437 = vmatprep.subr.bf16.mxu1 %v3655_v4 }
 0x9ad   :  { %v956_v61 = vpop.permute.xlu0 %955 }
 0x9ae   :  { %v958_v62 = vadd.f32 %v956_v61, %v948_v60 }
 0x9b0   :  { %3565 = vtanh.f32 %v958_v62 }
 0x9ba   :  { %v3566_v63 = vpop.eup %3565 }
 0x9bb   :  { %972 = vrot.lane.b32.xlu1 %v3566_v63, %s3663_s4 }
 0xa2d   :  { %v973_v0 = vpop.permute.xlu1 %972 }
 0xa2e   :  { %v975_v1 = vmul.f32 %v973_v0, %v941_v55 }
 0xa30   :  { %v989_v3 = vrot.slane %v975_v1, %v3777_v33 }
 0xa32   :  { %990 = vrot.lane.b32.xlu1 %v989_v3, %s3662_s25 }
 0xa7d   :  { %v1151_v6 = vpop.f32.mrb[10].mxu1 }
 0xa7e   :  { %v1162_v8 = vrot.slane %v1151_v6, %v3777_v33  ;;  %v3254_v9 = vpop.f32.mrb[11].mxu1 }
 0xa80   :  { %1163 = vrot.lane.b32.xlu0 %v1162_v8, %s3659_s19 }
 0xaa4   :  { %v3928_v10 = vpop.permute.xlu1 %990 }
 0xaa5   :  { %3246 = vmatmul.mubr.msk.f32.vlgmr.msra.gmra.mrb[4].mxu0 %vm297_vm1, %v3928_v10 }
 0xaa6   :  { %3430 = vmatpush3.bf16.msra.mxu0 %v3720_v5  ;;  %3259 = vmatprep.mubr.msk.f32.mxu0 %vm3656_vm0, %v3657_v7 }
 0xaa7   :  { %3434 = vmatprep.subr.bf16.mxu0 %v3655_v4 }
 0xaf2   :  { %v1164_v11 = vpop.permute.xlu0 %1163 }
 0xaf3   :  { %v1166_v12 = vadd.f32 %v1164_v11, %v3895_v22 }
 0xaf5   :  { %3567 = vtanh.f32 %v1166_v12  ;;  %v1172_v15 = vmul.f32 0.5, %v1166_v12 }
 0xaf7   :  { %3569 = vtanh.f32 %v1172_v15 }
 0xaff   :  { %v3568_v13 = vpop.eup %3567 }
 0xb00   :  { %1190 = vrot.lane.b32.xlu0 %v3568_v13, %s3660_s2 }
 0xb01   :  { %v3570_v16 = vpop.eup %3569 }
 0xb02   :  { %v1174_v17 = vmul.f32 0.5, %v3570_v16 }
 0xb04   :  { %v1175_v18 = vadd.f32 0.5, %v1174_v17 }
 0xb06   :  { %v1188_v26 = vmul.f32 %v1175_v18, %v969_v41 }
 0xb72   :  { %v1191_v20 = vpop.permute.xlu0 %1190 }
 0xb73   :  { %v1193_v21 = vmul.f32 %v1191_v20, %v1175_v18 }
 0xb75   :  { %1195 = vrot.lane.b32.xlu1 %v1193_v21, %s3661_s22 }
 0xb78   :  { %v1076_v24 = vpop.f32.mrb[4].mxu0 }
 0xb79   :  { %v3247_v25 = vpop.f32.mrb[5].mxu0  ;;  %v1080_v30 = vadd.f32 %v1076_v24, %v259_v28 }
 0xb7b   :  { %v1167_v50 = vmul.f32 0.5, %v1080_v30 }
 0xbe7   :  { %v1196_v27 = vpop.permute.xlu1 %1195 }
 0xbe8   :  { %v3941_v29 = vadd.f32 %v1196_v27, %v1188_v26 }
 0xbea   :  { %3571 = vtanh.f32 %v3941_v29 }
 0xbeb   :  { %3573 = vtanh.f32 %v1080_v30 }
 0xbec   :  { %3575 = vtanh.f32 %v1167_v50 }
 0xbf4   :  { %v3572_v34 = vpop.eup %3571 }
 0xbf5   :  { %1207 = vrot.lane.b32.xlu0 %v3572_v34, %s3663_s4  ;;  %v3574_v35 = vpop.eup %3573 }
 0xbf6   :  { %v3576_v36 = vpop.eup %3575 }
 0xbf7   :  { %v1169_v39 = vmul.f32 0.5, %v3576_v36 }
 0xbf9   :  { %1179 = vrot.lane.b32.xlu0 %v3574_v35, %s3660_s2  ;;  %v1170_v43 = vadd.f32 0.5, %v1169_v39 }
 0xbfb   :  { %v1177_v46 = vmul.f32 %v1170_v43, %v958_v62 }
 0xc67   :  { %v1208_v37 = vpop.permute.xlu0 %1207 }
 0xc68   :  { %v1210_v38 = vmul.f32 %v1208_v37, %v1175_v18 }
 0xc6a   :  { %v3947_v41 = vrot.slane %v1210_v38, %v3777_v33 }
 0xc6b   :  { %v1180_v42 = vpop.permute.xlu0 %1179 }
 0xc6c   :  { %1310 = vrot.lane.b32.xlu1 %v3947_v41, %s3661_s22  ;;  %v1182_v44 = vmul.f32 %v1180_v42, %v1170_v43 }
 0xc70   :  { %1184 = vrot.lane.b32.xlu1 %v1182_v44, %s3661_s22 }
 0xcde   :  { %v1311_v45 = vpop.permute.xlu1 %1310 }
 0xcdf   :  { %3267 = vmatmul.mubr.msk.f32.vlgmr.msra.gmra.mrb[12].mxu1 %vm297_vm1, %v1311_v45 }
 0xce0   :  { %3439 = vmatpush3.bf16.msra.mxu1 %v3743_v14  ;;  %3280 = vmatprep.mubr.msk.f32.mxu1 %vm3656_vm0, %v3657_v7 }
 0xce1   :  { %3443 = vmatprep.subr.bf16.mxu1 %v3655_v4 }
 0xce2   :  { %v1185_v52 = vpop.permute.xlu1 %1184 }
 0xce3   :  { %v1187_v47 = vadd.f32 %v1185_v52, %v1177_v46 }
 0xce5   :  { %3577 = vtanh.f32 %v1187_v47 }
 0xcef   :  { %v3578_v48 = vpop.eup %3577 }
 0xcf0   :  { %1201 = vrot.lane.b32.xlu0 %v3578_v48, %s3663_s4 }
 0xd62   :  { %v1202_v51 = vpop.permute.xlu0 %1201 }
 0xd63   :  { %v1204_v55 = vmul.f32 %v1202_v51, %v1170_v43 }
 0xd65   :  { %v1218_v56 = vrot.slane %v1204_v55, %v3777_v33 }
 0xd67   :  { %1219 = vrot.lane.b32.xlu1 %v1218_v56, %s3662_s25 }
 0xdb2   :  { %v1380_v59 = vpop.f32.mrb[12].mxu1 }
 0xdb3   :  { %v1391_v60 = vrot.slane %v1380_v59, %v3777_v33  ;;  %v3268_v61 = vpop.f32.mrb[13].mxu1 }
 0xdb5   :  { %1392 = vrot.lane.b32.xlu0 %v1391_v60, %s3659_s19 }
 0xdd9   :  { %v3962_v62 = vpop.permute.xlu1 %1219 }
 0xdda   :  { %3260 = vmatmul.mubr.msk.f32.vlgmr.msra.gmra.mrb[6].mxu0 %vm297_vm1, %v3962_v62 }
 0xddb   :  { %3436 = vmatpush3.bf16.msra.mxu0 %v3720_v5  ;;  %3273 = vmatprep.mubr.msk.f32.mxu0 %vm3656_vm0, %v3657_v7 }
 0xddc   :  { %3440 = vmatprep.subr.bf16.mxu0 %v3655_v4 }
 0xe27   :  { %v1393_v63 = vpop.permute.xlu0 %1392 }
 0xe28   :  { %v1395_v0 = vadd.f32 %v1393_v63, %v259_v28 }
 0xe2a   :  { %3579 = vtanh.f32 %v1395_v0  ;;  %v1401_v3 = vmul.f32 0.5, %v1395_v0 }
 0xe2c   :  { %3581 = vtanh.f32 %v1401_v3 }
 0xe34   :  { %v3580_v1 = vpop.eup %3579 }
 0xe35   :  { %1419 = vrot.lane.b32.xlu1 %v3580_v1, %s3660_s2 }
 0xe36   :  { %v3582_v6 = vpop.eup %3581 }
 0xe37   :  { %v1403_v8 = vmul.f32 0.5, %v3582_v6 }
 0xe39   :  { %v1404_v9 = vadd.f32 0.5, %v1403_v8 }
 0xe3b   :  { %v1417_v20 = vmul.f32 %v1404_v9, %v3941_v29 }
 0xea7   :  { %v1420_v11 = vpop.permute.xlu1 %1419 }
 0xea8   :  { %v1422_v12 = vmul.f32 %v1420_v11, %v1404_v9 }
 0xeaa   :  { %1424 = vrot.lane.b32.xlu0 %v1422_v12, %s3661_s22 }
 0xead   :  { %v1305_v13 = vpop.f32.mrb[6].mxu0 }
 0xeae   :  { %v1309_v15 = vadd.f32 %v1305_v13, %v3895_v22  ;;  %v3261_v16 = vpop.f32.mrb[7].mxu0 }
 0xeb0   :  { %3583 = vtanh.f32 %v1309_v15  ;;  %v1396_v18 = vmul.f32 0.5, %v1309_v15 }
 0xeb2   :  { %3585 = vtanh.f32 %v1396_v18 }
 0xeba   :  { %v3584_v17 = vpop.eup %3583 }
 0xebb   :  { %1408 = vrot.lane.b32.xlu0 %v3584_v17, %s3660_s2 }
 0xebc   :  { %v3586_v25 = vpop.eup %3585 }
 0xebd   :  { %v1398_v26 = vmul.f32 0.5, %v3586_v25 }
 0xebf   :  { %v1399_v22 = vadd.f32 0.5, %v1398_v26 }
 0xec1   :  { %v1406_v29 = vmul.f32 %v1399_v22, %v1187_v47 }
 0xf1c   :  { %v1425_v21 = vpop.permute.xlu0 %1424 }
 0xf1d   :  { %v3975_v24 = vadd.f32 %v1425_v21, %v1417_v20 }
 0xf1f   :  { %3587 = vtanh.f32 %v3975_v24 }
 0xf29   :  { %v3588_v27 = vpop.eup %3587 }
 0xf2a   :  { %1436 = vrot.lane.b32.xlu1 %v3588_v27, %s3663_s4 }
 0xf2d   :  { %v1409_v28 = vpop.permute.xlu0 %1408 }
 0xf2e   :  { %v1411_v30 = vmul.f32 %v1409_v28, %v1399_v22 }
 0xf30   :  { %1413 = vrot.lane.b32.xlu0 %v1411_v30, %s3661_s22 }
 0xf9c   :  { %v1437_v34 = vpop.permute.xlu1 %1436 }
 0xf9d   :  { %v1439_v35 = vmul.f32 %v1437_v34, %v1404_v9 }
 0xf9f   :  { %v3981_v50 = vrot.slane %v1439_v35, %v3777_v33 }
 0xfa1   :  { %1537 = vrot.lane.b32.xlu1 %v3981_v50, %s3661_s22 }
 0xfa2   :  { %v1414_v36 = vpop.permute.xlu0 %1413 }
 0xfa3   :  { %v1416_v37 = vadd.f32 %v1414_v36, %v1406_v29 }
 0xfa5   :  { %3589 = vtanh.f32 %v1416_v37 }
 0xfaf   :  { %v3590_v38 = vpop.eup %3589 }
 0xfb0   :  { %1430 = vrot.lane.b32.xlu1 %v3590_v38, %s3663_s4 }
0x1013   :  { %v1538_v39 = vpop.permute.xlu1 %1537 }
0x1014   :  { %3281 = vmatmul.mubr.msk.f32.vlgmr.msra.gmra.mrb[14].mxu1 %vm297_vm1, %v1538_v39 }
0x1015   :  { %3445 = vmatpush3.bf16.msra.mxu1 %v3743_v14  ;;  %3294 = vmatprep.mubr.msk.f32.mxu1 %vm3656_vm0, %v3657_v7 }
0x1016   :  { %3449 = vmatprep.subr.bf16.mxu1 %v3655_v4 }
0x1022   :  { %v1431_v42 = vpop.permute.xlu1 %1430 }
0x1023   :  { %v1433_v43 = vmul.f32 %v1431_v42, %v1399_v22 }
0x1025   :  { %v1447_v44 = vrot.slane %v1433_v43, %v3777_v33 }
0x1027   :  { %1448 = vrot.lane.b32.xlu0 %v1447_v44, %s3662_s25 }
0x1099   :  { %v3993_v45 = vpop.permute.xlu0 %1448 }
0x109a   :  { %3274 = vmatmul.mubr.msk.f32.vlgmr.msra.gmra.mrb[8].mxu0 %vm297_vm1, %v3993_v45 }
0x109b   :  { %3442 = vmatpush3.bf16.msra.mxu0 %v3720_v5  ;;  %3287 = vmatprep.mubr.msk.f32.mxu0 %vm3656_vm0, %v3657_v7 }
0x109c   :  { %3446 = vmatprep.subr.bf16.mxu0 %v3655_v4 }
0x10e7   :  { %v1607_v46 = vpop.f32.mrb[14].mxu1 }
0x10e8   :  { %v1618_v52 = vrot.slane %v1607_v46, %v3777_v33  ;;  %v3282_v47 = vpop.f32.mrb[15].mxu1 }
0x10ea   :  { %1619 = vrot.lane.b32.xlu1 %v1618_v52, %s3659_s19 }
0x115c   :  { %v1620_v48 = vpop.permute.xlu1 %1619 }
0x115d   :  { %v1622_v51 = vadd.f32 %v1620_v48, %v3907_v40 }
0x115f   :  { %3591 = vtanh.f32 %v1622_v51  ;;  %v1628_v63 = vmul.f32 0.5, %v1622_v51 }
0x1169   :  { %v3592_v55 = vpop.eup %3591 }
0x116a   :  { %1646 = vrot.lane.b32.xlu0 %v3592_v55, %s3660_s2 }
0x116d   :  { %v1532_v56 = vpop.f32.mrb[8].mxu0 }
0x116e   :  { %v1536_v59 = vadd.f32 %v1532_v56, %v3899_v23  ;;  %v3275_v60 = vpop.f32.mrb[9].mxu0 }
0x1170   :  { %3593 = vtanh.f32 %v1536_v59  ;;  %v1623_v1 = vmul.f32 0.5, %v1536_v59 }
0x1171   :  { %3595 = vtanh.f32 %v1628_v63 }
0x1172   :  { %3597 = vtanh.f32 %v1623_v1 }
0x117a   :  { %v3594_v61 = vpop.eup %3593 }
0x117b   :  { %1635 = vrot.lane.b32.xlu0 %v3594_v61, %s3660_s2  ;;  %v3596_v0 = vpop.eup %3595 }
0x117c   :  { %v1630_v3 = vmul.f32 0.5, %v3596_v0  ;;  %v3598_v9 = vpop.eup %3597 }
0x117d   :  { %v1625_v11 = vmul.f32 0.5, %v3598_v9 }
0x117e   :  { %v1631_v6 = vadd.f32 0.5, %v1630_v3 }
0x117f   :  { %v1626_v12 = vadd.f32 0.5, %v1625_v11 }
0x1180   :  { %v1644_v15 = vmul.f32 %v1631_v6, %v3975_v24 }
0x1181   :  { %v1633_v20 = vmul.f32 %v1626_v12, %v1416_v37 }
0x11dc   :  { %v1647_v40 = vpop.permute.xlu0 %1646 }
0x11dd   :  { %v1649_v8 = vmul.f32 %v1647_v40, %v1631_v6 }
0x11df   :  { %1651 = vrot.lane.b32.xlu1 %v1649_v8, %s3661_s22 }
0x11ed   :  { %v1636_v23 = vpop.permute.xlu0 %1635 }
0x11ee   :  { %v1638_v13 = vmul.f32 %v1636_v23, %v1626_v12 }
0x11f0   :  { %1640 = vrot.lane.b32.xlu0 %v1638_v13, %s3661_s22 }
0x1251   :  { %v1652_v16 = vpop.permute.xlu1 %1651 }
0x1252   :  { %v4010_v17 = vadd.f32 %v1652_v16, %v1644_v15 }
0x1254   :  { %3599 = vtanh.f32 %v4010_v17 }
0x125e   :  { %v3600_v18 = vpop.eup %3599 }
0x125f   :  { %1663 = vrot.lane.b32.xlu1 %v3600_v18, %s3663_s4 }
0x1262   :  { %v1641_v21 = vpop.permute.xlu0 %1640 }
0x1263   :  { %v1643_v25 = vadd.f32 %v1641_v21, %v1633_v20 }
0x1265   :  { %3601 = vtanh.f32 %v1643_v25 }
0x126f   :  { %v3602_v26 = vpop.eup %3601 }
0x1270   :  { %1657 = vrot.lane.b32.xlu0 %v3602_v26, %s3663_s4 }
0x12d1   :  { %v1664_v27 = vpop.permute.xlu1 %1663 }
0x12d2   :  { %v1666_v22 = vmul.f32 %v1664_v27, %v1631_v6 }
0x12d4   :  { %v4016_v28 = vrot.slane %v1666_v22, %v3777_v33 }
0x12d6   :  { %1764 = vrot.lane.b32.xlu1 %v4016_v28, %s3661_s22 }
0x12e2   :  { %v1658_v24 = vpop.permute.xlu0 %1657 }
0x12e3   :  { %v1660_v30 = vmul.f32 %v1658_v24, %v1626_v12 }
0x12e5   :  { %v1674_v34 = vrot.slane %v1660_v30, %v3777_v33 }
0x12e7   :  { %1675 = vrot.lane.b32.xlu1 %v1674_v34, %s3662_s25 }
0x1348   :  { %v1765_v35 = vpop.permute.xlu1 %1764 }
0x1349   :  { %3295 = vmatmul.mubr.msk.f32.vlgmr.msra.gmra.mrb[16].mxu1 %vm297_vm1, %v1765_v35 }
0x134a   :  { %3451 = vmatpush3.bf16.msra.mxu1 %v3743_v14  ;;  %3308 = vmatprep.mubr.msk.f32.mxu1 %vm3656_vm0, %v3657_v7 }
0x1359   :  { %v4026_v29 = vpop.permute.xlu1 %1675 }
0x135a   :  { %3288 = vmatmul.mubr.msk.f32.vlgmr.msra.gmra.mrb[10].mxu0 %vm297_vm1, %v4026_v29 }
0x135b   :  { %3448 = vmatpush3.bf16.msra.mxu0 %v3720_v5  ;;  %3301 = vmatprep.mubr.msk.f32.mxu0 %vm3656_vm0, %v3657_v7 }
0x141c   :  { %v1834_v36 = vpop.f32.mrb[16].mxu1 }
0x141d   :  { %v1845_v37 = vrot.slane %v1834_v36, %v3777_v33  ;;  %v3296_v38 = vpop.f32.mrb[17].mxu1 }
0x141f   :  { %1846 = vrot.lane.b32.xlu0 %v1845_v37, %s3659_s19 }
0x142d   :  { %v1759_v14 = vpop.f32.mrb[10].mxu0 }
0x142e   :  { %v1763_v39 = vadd.f32 %v1759_v14, %v3813_v57  ;;  %v3289_v42 = vpop.f32.mrb[11].mxu0 }
0x1430   :  { %3603 = vtanh.f32 %v1763_v39  ;;  %v1850_v46 = vmul.f32 0.5, %v1763_v39 }
0x143a   :  { %v3604_v43 = vpop.eup %3603 }
0x143b   :  { %1862 = vrot.lane.b32.xlu0 %v3604_v43, %s3660_s2 }
0x1491   :  { %v1847_v44 = vpop.permute.xlu0 %1846 }
0x1492   :  { %v1849_v5 = vadd.f32 %v1847_v44, %v3863_v54 }
0x1494   :  { %3605 = vtanh.f32 %v1849_v5  ;;  %v1855_v57 = vmul.f32 0.5, %v1849_v5 }
0x1495   :  { %3607 = vtanh.f32 %v1850_v46  ;;  %v43_v46 = vld [vmem:[%s4378_s0 + $0x2] sm:$0x3] }
0x1496   :  { %3609 = vtanh.f32 %v1855_v57 }
0x149e   :  { %v3606_v52 = vpop.eup %3605 }
0x149f   :  { %1873 = vrot.lane.b32.xlu1 %v3606_v52, %s3660_s2  ;;  %v3608_v47 = vpop.eup %3607  ;;  %v45_v52 = vld [vmem:[%s4378_s0 + $0x6] sm:$0x3] }
0x14a0   :  { %v1852_v48 = vmul.f32 0.5, %v3608_v47  ;;  %v3610_v59 = vpop.eup %3609  ;;  %v47_v47 = vld [vmem:[%s4378_s0 + $0xa] sm:$0x3] }
0x14a1   :  { %v1857_v60 = vmul.f32 0.5, %v3610_v59 }
0x14a2   :  { %v1853_v51 = vadd.f32 0.5, %v1852_v48  ;;  %v49_v48 = vld [vmem:[%s4378_s0 + $0xe] sm:$0x3] }
0x14a3   :  { %v1858_v61 = vadd.f32 0.5, %v1857_v60 }
0x14a4   :  { %v1860_v0 = vmul.f32 %v1853_v51, %v1643_v25 }
0x14a5   :  { %v1871_v40 = vmul.f32 %v1858_v61, %v4010_v17 }
0x14ad   :  { %v1863_v55 = vpop.permute.xlu0 %1862 }
0x14ae   :  { %v1865_v56 = vmul.f32 %v1863_v55, %v1853_v51 }
0x14b0   :  { %1867 = vrot.lane.b32.xlu0 %v1865_v56, %s3661_s22 }
0x1511   :  { %v1874_v63 = vpop.permute.xlu1 %1873 }
0x1512   :  { %v1876_v54 = vmul.f32 %v1874_v63, %v1858_v61 }
0x1514   :  { %1878 = vrot.lane.b32.xlu1 %v1876_v54, %s3661_s22 }
0x1522   :  { %v1868_v1 = vpop.permute.xlu0 %1867 }
0x1523   :  { %v1870_v3 = vadd.f32 %v1868_v1, %v1860_v0 }
0x1525   :  { %3611 = vtanh.f32 %v1870_v3 }
0x152f   :  { %v3612_v6 = vpop.eup %3611 }
0x1530   :  { %1884 = vrot.lane.b32.xlu0 %v3612_v6, %s3663_s4 }
0x1586   :  { %v1879_v8 = vpop.permute.xlu1 %1878 }
0x1587   :  { %v4043_v9 = vadd.f32 %v1879_v8, %v1871_v40  ;;  %v44_v8 = vld [vmem:[%s4378_s0 + $0x4] sm:$0x3] }
0x1589   :  { %3613 = vtanh.f32 %v4043_v9 }
0x1593   :  { %v3614_v11 = vpop.eup %3613 }
0x1594   :  { %1890 = vrot.lane.b32.xlu1 %v3614_v11, %s3663_s4  ;;  %v46_v11 = vld [vmem:[%s4378_s0 + $0x8] sm:$0x3] }
0x15a2   :  { %v1885_v12 = vpop.permute.xlu0 %1884 }
0x15a3   :  { %v1887_v23 = vmul.f32 %v1885_v12, %v1853_v51  ;;  %v48_v12 = vld [vmem:[%s4378_s0 + $0xc] sm:$0x3] }
0x15a5   :  { %v1901_v13 = vrot.slane %v1887_v23, %v3777_v33 }
0x15a7   :  { %1902 = vrot.lane.b32.xlu0 %v1901_v13, %s3662_s25  ;;  %v3060_v13 = vld [vmem:[%s4383_s5 + $0x90] sm:$0xff] }
0x1606   :  { %v1891_v15 = vpop.permute.xlu1 %1890 }
0x1607   :  { %v1893_v16 = vmul.f32 %v1891_v15, %v1858_v61  ;;  %v3061_v15 = vld [vmem:[%s4383_s5 + $0x98] sm:$0xff] }
0x1609   :  { %v4050_v18 = vrot.slane %v1893_v16, %v3777_v33  ;;  %v3046_v16 = vld [vmem:[%s4383_s5 + $0x40] sm:$0xff] }
0x160b   :  { %1991 = vrot.lane.b32.xlu1 %v4050_v18, %s3661_s22 }
0x1619   :  { %v4054_v17 = vpop.permute.xlu0 %1902 }
0x161a   :  { %3302 = vmatmul.mubr.msk.f32.vlgmr.msra.gmra.mrb[12].mxu0 %vm297_vm1, %v4054_v17 }
0x167d   :  { %v1992_v20 = vpop.permute.xlu1 %1991 }
0x167e   :  { %3309 = vmatmul.mubr.msk.f32.vlgmr.msra.gmra.mrb[18].mxu1 %vm297_vm1, %v1992_v20  ;;  %vm2919_vm1 = vcmask 195584  }
0x16ed   :  { %v1986_v21 = vpop.f32.mrb[12].mxu0 }
0x16ee   :  { %v1990_v25 = vadd.f32 %v1986_v21, %v3817_v58  ;;  %v3303_v26 = vpop.f32.mrb[13].mxu0  ;;  %v3488_v21 = vpack.c.bf16 %v3061_v15, %v3060_v13 }
0x16f0   :  { %3615 = vtanh.f32 %v1990_v25  ;;  %v2077_v34 = vmul.f32 0.5, %v1990_v25  ;;  %v3047_v25 = vld [vmem:[%s4383_s5 + $0x48] sm:$0xff] }
0x16f1   :  { %v3452_v26 = vpack.c.bf16 %v3047_v25, %v3046_v16 }
0x16f2   :  { %3617 = vtanh.f32 %v2077_v34 }
0x16f3   :  { %3453 = vmatprep.subr.bf16.mxu0 %v3452_v26 }
0x16f4   :  { %3455 = vmatpush3.bf16.msra.mxu0 %v3452_v26 }
0x16fa   :  { %v3616_v27 = vpop.eup %3615 }
0x16fb   :  { %2089 = vrot.lane.b32.xlu0 %v3616_v27, %s3660_s2  ;;  %v3062_v27 = vld [vmem:[%s4383_s5 + $0xa0] sm:$0xff] }
0x16fc   :  { %v3618_v35 = vpop.eup %3617 }
0x16fd   :  { %v2079_v36 = vmul.f32 0.5, %v3618_v35  ;;  %v3049_v35 = vld [vmem:[%s4383_s5 + $0x58] sm:$0xff] }
0x16ff   :  { %v2080_v37 = vadd.f32 0.5, %v2079_v36 }
0x1701   :  { %v2087_v43 = vmul.f32 %v2080_v37, %v1870_v3 }
0x1751   :  { %v2061_v22 = vpop.f32.mrb[18].mxu1 }
0x1752   :  { %v2072_v24 = vrot.slane %v2061_v22, %v3777_v33  ;;  %v3310_v30 = vpop.f32.mrb[19].mxu1  ;;  %v3063_v22 = vld [vmem:[%s4383_s5 + $0xa8] sm:$0xff] }
0x1753   :  { %v3492_v34 = vpack.c.bf16 %v3063_v22, %v3062_v27 }
0x1754   :  { %2073 = vrot.lane.b32.xlu1 %v2072_v24, %s3659_s19  ;;  %v3048_v24 = vld [vmem:[%s4383_s5 + $0x50] sm:$0xff] }
0x1755   :  { %v3456_v36 = vpack.c.bf16 %v3049_v35, %v3048_v24  ;;  %v3070_v35 = vld [vmem:[%s4383_s5 + $0xd0] sm:$0xff] }
0x1757   :  { %3457 = vmatprep.subr.bf16.mxu0 %v3456_v36 }
0x1758   :  { %3459 = vmatpush3.bf16.msra.mxu0 %v3456_v36 }
0x176d   :  { %v2090_v38 = vpop.permute.xlu0 %2089 }
0x176e   :  { %v2092_v14 = vmul.f32 %v2090_v38, %v2080_v37  ;;  %v3050_v38 = vld [vmem:[%s4383_s5 + $0x60] sm:$0xff] }
0x1770   :  { %2094 = vrot.lane.b32.xlu0 %v2092_v14, %s3661_s22 }
0x17c6   :  { %v2074_v58 = vpop.permute.xlu1 %2073 }
0x17c7   :  { %v2076_v39 = vadd.f32 %v2074_v58, %v3806_v53  ;;  %v3051_v58 = vld [vmem:[%s4383_s5 + $0x68] sm:$0xff] }
0x17c9   :  { %3619 = vtanh.f32 %v2076_v39  ;;  %v2082_v51 = vmul.f32 0.5, %v2076_v39  ;;  %v3068_v39 = vld [vmem:[%s4383_s5 + $0xc0] sm:$0xff] }
0x17d3   :  { %v3620_v42 = vpop.eup %3619 }
0x17d4   :  { %2100 = vrot.lane.b32.xlu1 %v3620_v42, %s3660_s2  ;;  %v3069_v42 = vld [vmem:[%s4383_s5 + $0xc8] sm:$0xff] }
0x17e2   :  { %v2095_v44 = vpop.permute.xlu0 %2094 }
0x17e3   :  { %v2097_v5 = vadd.f32 %v2095_v44, %v2087_v43  ;;  %v4188_v43 = vpack.c.bf16 %v3069_v42, %v3068_v39  ;;  %v3052_v44 = vld [vmem:[%s4383_s5 + $0x70] sm:$0xff] }
0x17e5   :  { %3621 = vtanh.f32 %v2097_v5 }
0x17e6   :  { %3623 = vtanh.f32 %v2082_v51 }
0x17ef   :  { %v3622_v53 = vpop.eup %3621 }
0x17f0   :  { %2111 = vrot.lane.b32.xlu0 %v3622_v53, %s3663_s4  ;;  %v3624_v55 = vpop.eup %3623  ;;  %v42_v53 = vld [vmem:[%s4378_s0] sm:$0x3] }
0x17f1   :  { %v2084_v56 = vmul.f32 0.5, %v3624_v55 }
0x17f3   :  { %v4100_v57 = vadd.f32 0.5, %v2084_v56 }
0x17f4   :  { %60 = vrot.lane.b32.xlu0 %v43_v46, %s3661_s22  ;;  %v2153_v46 = vld [vmem:[%s4383_s5] sm:$0xff] }
0x17f8   :  { %64 = vrot.lane.b32.xlu0 %v45_v52, %s3661_s22  ;;  %v2154_v52 = vld [vmem:[%s4383_s5 + $0x8] sm:$0xff] }
0x17fc   :  { %68 = vrot.lane.b32.xlu0 %v47_v47, %s3661_s22  ;;  %v4209_v47 = vpack.c.bf16 %v2154_v52, %v2153_v46  ;;  %v3073_v46 = vld [vmem:[%s4383_s5 + $0xe8] sm:$0xff]  ;;  %v2155_v52 = vld [vmem:[%s4383_s5 + $0x10] sm:$0xff] }
0x1800   :  { %72 = vrot.lane.b32.xlu0 %v49_v48, %s3661_s22 }
0x1804   :  { %544 = vrot.lane.b32.xlu0 %v3839_v31, %s3659_s19 }
0x1808   :  { %1003 = vrot.lane.b32.xlu0 %v3913_v49, %s3659_s19 }
0x180c   :  { %1687 = vrot.lane.b32.xlu0 %v4016_v28, %s3659_s19 }
0x1846   :  { %v2101_v59 = vpop.permute.xlu1 %2100 }
0x1847   :  { %v2103_v60 = vmul.f32 %v2101_v59, %v4100_v57 }
0x1849   :  { %2105 = vrot.lane.b32.xlu1 %v2103_v60, %s3661_s22 }
0x1862   :  { %v2112_v61 = vpop.permute.xlu0 %2111 }
0x1863   :  { %v2114_v63 = vmul.f32 %v2112_v61, %v2080_v37  ;;  %v3065_v37 = vld [vmem:[%s4383_s5 + $0xb8] sm:$0xff]  ;;  %v2471_v61 = vld [vmem:[#allocation2 + $0x10] sm:$0x3] }
0x1865   :  { %v2128_v31 = vrot.slane %v2114_v63, %v3777_v33  ;;  %v2472_v63 = vld [vmem:[#allocation2 + $0x12] sm:$0x3] }
0x1866   :  { %v61_v49 = vpop.permute.xlu0 %60 }
0x1867   :  { %84 = vst.msk [vmem:[#allocation2 + $0x2] sm:$0x3] %vm82_vm4, %v61_v49  ;;  %2129 = vrot.lane.b32.xlu0 %v2128_v31, %s3662_s25 }
0x1868   :  { %765 = vst.msk [vmem:[#allocation2 + $0x2] sm:$0x3] %vm534_vm5, %v3885_v19  ;;  %v2098_v19 = vmul.f32 %v4100_v57, %v4043_v9  ;;  %v3059_v9 = vld [vmem:[%s4383_s5 + $0x88] sm:$0xff] }
0x186a   :  { %v65_v28 = vpop.permute.xlu0 %64 }
0x186b   :  { %86 = vst.msk [vmem:[#allocation2 + $0x6] sm:$0x3] %vm82_vm4, %v65_v28 }
0x186c   :  { %1223 = vst.msk [vmem:[#allocation2 + $0x6] sm:$0x3] %vm534_vm5, %v3962_v62 }
0x186e   :  { %v69_v54 = vpop.permute.xlu0 %68 }
0x186f   :  { %88 = vst.msk [vmem:[#allocation2 + $0xa] sm:$0x3] %vm82_vm4, %v69_v54 }
0x1872   :  { %v73_v0 = vpop.permute.xlu0 %72 }
0x1873   :  { %90 = vst.msk [vmem:[#allocation2 + $0xe] sm:$0x3] %vm82_vm4, %v73_v0 }
0x1876   :  { %v545_v1 = vpop.permute.xlu0 %544 }
0x1877   :  { %549 = vst.msk [vmem:[#allocation2 + $0xe] sm:$0x3] %vm548_vm6, %v545_v1 }
0x187a   :  { %v1004_v3 = vpop.permute.xlu0 %1003 }
0x187b   :  { %1007 = vst.msk [vmem:[#allocation2 + $0xa] sm:$0x3] %vm548_vm6, %v1004_v3 }
0x187c   :  { %1678 = vst.msk [vmem:[#allocation2 + $0xa] sm:$0x3] %vm534_vm5, %v4026_v29  ;;  %v3058_v29 = vld [vmem:[%s4383_s5 + $0x80] sm:$0xff] }
0x187d   :  { %v3484_v23 = vpack.c.bf16 %v3059_v9, %v3058_v29 }
0x187e   :  { %v1688_v20 = vpop.permute.xlu0 %1687 }
0x187f   :  { %3485 = vmatprep.subr.bf16.mxu1 %v3484_v23 }
0x1880   :  { %3487 = vmatpush3.bf16.msra.mxu1 %v3484_v23 }
0x1881   :  { %3489 = vmatprep.subr.bf16.mxu1 %v3488_v21 }
0x1883   :  { %v2468_v0 = vld [vmem:[#allocation2 + $0xa] sm:$0x3] }
0x1884   :  { %3491 = vmatpush3.bf16.msra.mxu1 %v3488_v21  ;;  %v2657_v3 = vld [vmem:[#allocation2 + $0xa] sm:$0x3] }
0x1885   :  { %3493 = vmatprep.subr.bf16.mxu1 %v3492_v34  ;;  %v2165_v15 = vld [vmem:[#allocation2 + $0xa] sm:$0x3] }
0x1888   :  { %3495 = vmatpush3.bf16.msra.mxu1 %v3492_v34 }
0x18bb   :  { %v2106_v62 = vpop.permute.xlu1 %2105 }
0x18bc   :  { %v2108_v6 = vadd.f32 %v2106_v62, %v2098_v19 }
0x18be   :  { %3625 = vtanh.f32 %v2108_v6 }
0x18c8   :  { %v3626_v40 = vpop.eup %3625 }
0x18c9   :  { %2117 = vrot.lane.b32.xlu1 %v3626_v40, %s3663_s4 }
0x18cd   :  { %62 = vrot.lane.b32.xlu1 %v44_v8, %s3661_s22 }
0x18d1   :  { %66 = vrot.lane.b32.xlu1 %v46_v11, %s3661_s22 }
0x18d5   :  { %70 = vrot.lane.b32.xlu1 %v48_v12, %s3661_s22 }
0x18d9   :  { %v2130_v30 = vpop.permute.xlu0 %2129  ;;  %1232 = vrot.lane.b32.xlu1 %v3947_v41, %s3659_s19  ;;  %v3064_v41 = vld [vmem:[%s4383_s5 + $0xb0] sm:$0xff] }
0x18da   :  { %2132 = vst.msk [vmem:[#allocation2 + $0xe] sm:$0x3] %vm534_vm5, %v2130_v30  ;;  %v3496_v14 = vpack.c.bf16 %v3065_v37, %v3064_v41 }
0x18dc   :  { %3497 = vmatprep.subr.bf16.mxu1 %v3496_v14 }
0x18dd   :  { %774 = vrot.lane.b32.xlu1 %v3869_v2, %s3659_s19  ;;  %v3460_v2 = vpack.c.bf16 %v3051_v58, %v3050_v38  ;;  %3499 = vmatpush3.bf16.msra.mxu1 %v3496_v14 }
0x18de   :  { %3501 = vmatprep.subr.bf16.mxu1 %v4188_v43 }
0x18df   :  { %3461 = vmatprep.subr.bf16.mxu0 %v3460_v2 }
0x18e0   :  { %3463 = vmatpush3.bf16.msra.mxu0 %v3460_v2 }
0x18e1   :  { %1460 = vrot.lane.b32.xlu1 %v3981_v50, %s3659_s19  ;;  %v3053_v50 = vld [vmem:[%s4383_s5 + $0x78] sm:$0xff] }
0x18e2   :  { %v3464_v5 = vpack.c.bf16 %v3053_v50, %v3052_v44  ;;  %v2470_v54 = vld [vmem:[#allocation2 + $0xe] sm:$0x3]  ;;  %v3072_v44 = vld [vmem:[%s4383_s5 + $0xe0] sm:$0xff] }
0x18e3   :  { %v2167_v16 = vld [vmem:[#allocation2 + $0xe] sm:$0x3] }
0x18e4   :  { %3465 = vmatprep.subr.bf16.mxu0 %v3464_v5 }
0x18e5   :  { %1914 = vrot.lane.b32.xlu1 %v4050_v18, %s3659_s19  ;;  %3467 = vmatpush3.bf16.msra.mxu0 %v3464_v5 }
0x18e6   :  { %3469 = vmatprep.subr.bf16.mxu0 %v4209_v47 }
0x18e9   :  { %58 = vrot.lane.b32.xlu1 %v42_v53, %s3661_s22 }
0x193b   :  { %v2118_v18 = vpop.permute.xlu1 %2117 }
0x193c   :  { %v2120_v48 = vmul.f32 %v2118_v18, %v4100_v57  ;;  %v2156_v18 = vld [vmem:[%s4383_s5 + $0x18] sm:$0xff] }
0x193e   :  { %v2140_v51 = vrot.slane %v2120_v48, %v3777_v33 }
0x193f   :  { %v63_v55 = vpop.permute.xlu1 %62 }
0x1940   :  { %85 = vst.msk [vmem:[#allocation2 + $0x4] sm:$0x3] %vm82_vm4, %v63_v55  ;;  %2141 = vrot.lane.b32.xlu0 %v2140_v51, %s3659_s19  ;;  %v2660_v55 = vld [vmem:[#allocation2 + $0x10] sm:$0x3] }
0x1941   :  { %994 = vst.msk [vmem:[#allocation2 + $0x4] sm:$0x3] %vm534_vm5, %v3928_v10 }
0x1942   :  { %1690 = vst.msk [vmem:[#allocation2 + $0x4] sm:$0x3] %vm548_vm6, %v1688_v20  ;;  %v2168_v20 = vld [vmem:[#allocation2 + $0x10] sm:$0x3] }
0x1943   :  { %v67_v56 = vpop.permute.xlu1 %66  ;;  %v2204_v37 = vcombine.low %v2167_v16, %v2168_v20 }
0x1944   :  { %87 = vst.msk [vmem:[#allocation2 + $0x8] sm:$0x3] %vm82_vm4, %v67_v56  ;;  %v2661_v56 = vld [vmem:[#allocation2 + $0x12] sm:$0x3] }
0x1945   :  { %v2218_v48 = vrot.slane %v2204_v37, %v3777_v33 }
0x1947   :  { %v71_v59 = vpop.permute.xlu1 %70 }
0x1948   :  { %89 = vst.msk [vmem:[#allocation2 + $0xc] sm:$0x3] %vm82_vm4, %v71_v59 }
0x1949   :  { %v2465_v62 = vld [vmem:[#allocation2 + $0x4] sm:$0x3] }
0x194a   :  { %v2162_v41 = vld [vmem:[#allocation2 + $0x4] sm:$0x3] }
0x194b   :  { %v1233_v60 = vpop.permute.xlu1 %1232 }
0x194c   :  { %1236 = vst.msk [vmem:[#allocation2 + $0x8] sm:$0x3] %vm548_vm6, %v1233_v60  ;;  %v3508_v60 = vpack.c.bf16 %v3073_v46, %v3072_v44 }
0x194d   :  { %1451 = vst.msk [vmem:[#allocation2 + $0x8] sm:$0x3] %vm534_vm5, %v3993_v45  ;;  %v2508_v45 = vcombine.low %v2471_v61, %v2472_v63  ;;  %v2662_v61 = vld [vmem:[#allocation2 + $0x14] sm:$0x3]  ;;  %v3472_v63 = vpack.c.bf16 %v2156_v18, %v2155_v52 }
0x194f   :  { %v775_v57 = vpop.permute.xlu1 %774  ;;  %v2522_v25 = vrot.slane %v2508_v45, %v3777_v33  ;;  %v2159_v45 = vld [vmem:[%s4383_s5 + $0x30] sm:$0xff] }
0x1950   :  { %778 = vst.msk [vmem:[#allocation2 + $0xc] sm:$0x3] %vm548_vm6, %v775_v57  ;;  %v3074_v57 = vld [vmem:[%s4383_s5 + $0xf0] sm:$0xff] }
0x1951   :  { %1905 = vst.msk [vmem:[#allocation2 + $0xc] sm:$0x3] %vm534_vm5, %v4054_v17 }
0x1953   :  { %v1461_v10 = vpop.permute.xlu1 %1460 }
0x1954   :  { %1463 = vst.msk [vmem:[#allocation2 + $0x6] sm:$0x3] %vm548_vm6, %v1461_v10  ;;  %v2467_v49 = vld [vmem:[#allocation2 + $0x8] sm:$0x3]  ;;  %v2659_v10 = vld [vmem:[#allocation2 + $0xe] sm:$0x3] }
0x1955   :  { %v2491_v6 = vcombine.low %v2467_v49, %v2468_v0  ;;  %v2656_v40 = vld [vmem:[#allocation2 + $0x8] sm:$0x3]  ;;  %v2158_v49 = vld [vmem:[%s4383_s5 + $0x28] sm:$0xff]  ;;  %v2697_v0 = vcombine.low %v2659_v10, %v2660_v55 }
0x1956   :  { %v2164_v26 = vld [vmem:[#allocation2 + $0x8] sm:$0x3] }
0x1957   :  { %v1915_v31 = vpop.permute.xlu1 %1914  ;;  %v2505_v24 = vrot.slane %v2491_v6, %v3777_v33 }
0x1958   :  { %1917 = vst.msk [vmem:[#allocation2 + $0x2] sm:$0x3] %vm548_vm6, %v1915_v31  ;;  %v2469_v28 = vld [vmem:[#allocation2 + $0xc] sm:$0x3]  ;;  %v2157_v31 = vld [vmem:[%s4383_s5 + $0x20] sm:$0xff] }
0x1959   :  { %v2507_v1 = vcombine.low %v2469_v28, %v2470_v54  ;;  %v2658_v19 = vld [vmem:[#allocation2 + $0xc] sm:$0x3]  ;;  %v2698_v28 = vcombine.low %v2661_v56, %v2662_v61 }
0x195a   :  { %v2166_v17 = vld [vmem:[#allocation2 + $0xc] sm:$0x3]  ;;  %v2681_v13 = vcombine.low %v2657_v3, %v2658_v19  ;;  %v2705_v19 = vrot.slane %v2697_v0, %v3777_v33 }
0x195b   :  { %v59_v8 = vpop.permute.xlu1 %58  ;;  %v2466_v11 = vld [vmem:[#allocation2 + $0x6] sm:$0x3]  ;;  %v2515_v21 = vrot.slane %v2507_v1, %v3777_v33  ;;  %v2203_v27 = vcombine.low %v2165_v15, %v2166_v17  ;;  %v3476_v1 = vpack.c.bf16 %v2158_v49, %v2157_v31  ;;  %v2160_v3 = vld [vmem:[%s4383_s5 + $0x38] sm:$0xff] }
0x195c   :  { %v2655_v29 = vld [vmem:[#allocation2 + $0x6] sm:$0x3]  ;;  %83 = vst.msk [vmem:[#allocation2] sm:$0x3] %vm82_vm4, %v59_v8  ;;  %v2490_v12 = vcombine.low %v2465_v62, %v2466_v11  ;;  %v2695_v14 = vrot.slane %v2681_v13, %v3777_v33  ;;  %v3480_v62 = vpack.c.bf16 %v2160_v3, %v2159_v45  ;;  %v2151_v17 = vld [vmem:[#allocation2 + $0xc] sm:$0x3] }
0x195d   :  { %v2163_v9 = vld [vmem:[#allocation2 + $0x6] sm:$0x3]  ;;  %v2680_v23 = vcombine.low %v2655_v29, %v2656_v40  ;;  %535 = vst.msk [vmem:[#allocation2] sm:$0x3] %vm534_vm5, %v3843_v32  ;;  %v3071_v32 = vld [vmem:[%s4383_s5 + $0xd8] sm:$0xff]  ;;  %v2523_v2 = vcombine.low %v2515_v21, %v2522_v25  ;;  %v2211_v42 = vrot.slane %v2203_v27, %v3777_v33 }
0x195e   :  { %v2498_v22 = vrot.slane %v2490_v12, %v3777_v33  ;;  %v2187_v34 = vcombine.low %v2163_v9, %v2164_v26  ;;  %v3504_v39 = vpack.c.bf16 %v3071_v32, %v3070_v35  ;;  %v2148_v8 = vld [vmem:[#allocation2 + $0x6] sm:$0x3]  ;;  %v2149_v11 = vld [vmem:[#allocation2 + $0x8] sm:$0x3]  ;;  %v2152_v29 = vld [vmem:[#allocation2 + $0xe] sm:$0x3] }
0x195f   :  { %v2688_v30 = vrot.slane %v2680_v23, %v3777_v33  ;;  %v2161_v36 = vld [vmem:[#allocation2 + $0x2] sm:$0x3]  ;;  %v2219_v59 = vcombine.low %v2211_v42, %v2218_v48  ;;  %v2147_v9 = vld [vmem:[#allocation2 + $0x4] sm:$0x3]  ;;  %v2326_v12 = vcombine.low %v2151_v17, %v2152_v29  ;;  %v2150_v13 = vld [vmem:[#allocation2 + $0xa] sm:$0x3] }
0x1960   :  { %v2506_v38 = vcombine.low %v2498_v22, %v2505_v24  ;;  %v2186_v58 = vcombine.low %v2161_v36, %v2162_v41  ;;  %v2201_v53 = vrot.slane %v2187_v34, %v3777_v33  ;;  %v2309_v23 = vcombine.low %v2147_v9, %v2148_v8  ;;  %v2146_v16 = vld [vmem:[#allocation2 + $0x2] sm:$0x3]  ;;  %v2912_v34 = vld [vmem:[%s4385_s7 + $0x8] sm:$0xff]  ;;  %v3078_v45 = vld [vmem:[%s4384_s6] ss:$0 sm:$0xff] }
0x1961   :  { %v2696_v50 = vcombine.low %v2688_v30, %v2695_v14  ;;  %v2325_v20 = vcombine.low %v2149_v11, %v2150_v13  ;;  %v2340_v25 = vrot.slane %v2326_v12, %v3777_v33  ;;  %v2911_v30 = vld [vmem:[%s4385_s7] sm:$0xff]  ;;  %v2913_v32 = vld [vmem:[%s4385_s7 + $0x10] sm:$0xff] }
0x1962   :  { %3365 = vmatprep.mubr.msk.f32.mxu1 %vm2220_vm7, %v2506_v38  ;;  %v2194_v5 = vrot.slane %v2186_v58, %v3777_v33  ;;  %v3517_v35 = vpack.c.bf16 %v2912_v34, %v2911_v30 }
0x1963   :  { %3366 = vmatmul.mubr.msk.f32.vlgmr.msra.gmra.mrb[20].mxu1 %vm2220_vm7, %v2523_v2  ;;  %v2333_v27 = vrot.slane %v2325_v20, %v3777_v33 }
0x1964   :  { %3503 = vmatpush3.bf16.msra.mxu1 %v4188_v43  ;;  %3384 = vmatprep.mubr.msk.f32.mxu1 %vm2220_vm7, %v2696_v50  ;;  %v2202_v51 = vcombine.low %v2194_v5, %v2201_v53  ;;  %v3075_v43 = vld [vmem:[%s4383_s5 + $0xf8] sm:$0xff]  ;;  %v4315_v5 = vld [vmem:[%s4384_s6 + $0x1] ss:$0 sm:$0xff] }
0x1965   :  { %3505 = vmatprep.subr.bf16.mxu1 %v3504_v39  ;;  %v3512_v54 = vpack.c.bf16 %v3075_v43, %v3074_v57  ;;  %v2341_v24 = vcombine.low %v2333_v27, %v2340_v25  ;;  %vm3084_vm8 = vcmp.ge.f32.partialorder %v4315_v5, 4.0  ;;  %vm3085_vm10 = vcmp.ge.f32.partialorder %v4315_v5, 5.0 }
0x1966   :  { %3327 = vmatprep.mubr.msk.f32.mxu0 %vm2220_vm7, %v2202_v51  ;;  %vm3086_vm11 = vcmp.ge.f32.partialorder %v4315_v5, 6.0  ;;  %vm3080_vm12 = vcmp.ge.f32.partialorder %v4315_v5, 0.0  ;;  %vm3081_vm13 = vcmp.ge.f32.partialorder %v4315_v5, 1.0  ;;  %vm3087_vm14 = vcmp.ge.f32.partialorder %v4315_v5, 7.0 }
0x1967   :  { %3328 = vmatmul.mubr.msk.f32.vlgmr.msra.gmra.mrb[14].mxu0 %vm2220_vm7, %v2219_v59  ;;  %vm3082_vm15 = vcmp.ge.f32.partialorder %v4315_v5, 2.0 }
0x1968   :  { %3507 = vmatpush3.bf16.msra.mxu1 %v3504_v39  ;;  %3471 = vmatpush3.bf16.msra.mxu0 %v4209_v47  ;;  %v2712_v47 = vrot.slane %v2698_v28, %v3777_v33 }
0x1969   :  { %3509 = vmatprep.subr.bf16.mxu1 %v3508_v60  ;;  %3473 = vmatprep.subr.bf16.mxu0 %v3472_v63 }
0x196a   :  { %v2713_v6 = vcombine.low %v2705_v19, %v2712_v47 }
0x196c   :  { %3511 = vmatpush3.bf16.msra.mxu1 %v3508_v60  ;;  %3475 = vmatpush3.bf16.msra.mxu0 %v3472_v63 }
0x196d   :  { %3513 = vmatprep.subr.bf16.mxu1 %v3512_v54  ;;  %3477 = vmatprep.subr.bf16.mxu0 %v3476_v1 }
0x1970   :  { %3515 = vmatpush3.bf16.msra.mxu1 %v3512_v54  ;;  %3479 = vmatpush3.bf16.msra.mxu0 %v3476_v1 }
0x1971   :  { %3481 = vmatprep.subr.bf16.mxu0 %v3480_v62 }
0x1973   :  { %3385 = vmatmul.mubr.msk.f32.vlgmr.msra.gmra.mrb[22].mxu1 %vm2220_vm7, %v2713_v6 }
0x1974   :  { %3483 = vmatpush3.bf16.msra.mxu0 %v3480_v62 }
0x1975   :  { %3516 = vmatprep.subr.bf16.mxu0 %v3655_v4  ;;  %v2323_v4 = vrot.slane %v2309_v23, %v3777_v33 }
0x19b2   :  { %v2142_v40 = vpop.permute.xlu0 %2141 }
0x19b3   :  { %2144 = vst.msk [vmem:[#allocation2] sm:$0x3] %vm548_vm6, %v2142_v40 }
0x19ba   :  { %v2145_v15 = vld [vmem:[#allocation2] sm:$0x3] }
0x19bb   :  { %v2308_v21 = vcombine.low %v2145_v15, %v2146_v16 }
0x19bd   :  { %v2316_v26 = vrot.slane %v2308_v21, %v3777_v33 }
0x19bf   :  { %v2324_v22 = vcombine.low %v2316_v26, %v2323_v4 }
0x19c1   :  { %3346 = vmatprep.mubr.msk.f32.mxu0 %vm2220_vm7, %v2324_v22 }
0x19c2   :  { %3347 = vmatmul.mubr.msk.f32.vlgmr.msra.gmra.mrb[14].mxu0 %vm2220_vm7, %v2341_v24 }
0x19c3   :  { %3393 = vmatprep.mubr.msk.f32.mxu0 %vm3656_vm0, %v3657_v7  ;;  %3518 = vmatpush3.bf16.msra.mxu0 %v3517_v35  ;;  %vm3083_vm0 = vcmp.ge.f32.partialorder %v4315_v5, 3.0 }
0x19c4   :  { %3391 = vmatprep.subr.mxu0 %v3657_v7 }
0x19c7   :  { %3392 = vmatpush3.msra.mxu0 %v2913_v32 }
0x1a36   :  { %v3367_v36 = vpop.f32.mrb[20].mxu1 }
0x1a37   :  { %v2594_v41 = vpop.f32.mrb[21].mxu1  ;;  %v2622_v14 = vcombine.high %v3367_v36, %v3367_v36  ;;  %v2629_v39 = vrot.slane %v3367_v36, %v3777_v33 }
0x1a38   :  { %v2605_v58 = vcombine.high %v2594_v41, %v2594_v41  ;;  %v2612_v42 = vrot.slane %v2594_v41, %v3777_v33 }
0x1a39   :  { %v2636_v50 = vrot.slane %v2622_v14, %v3777_v33  ;;  %v2637_v18 = vcombine.high %v2629_v39, %v2629_v39 }
0x1a3a   :  { %v2619_v7 = vrot.slane %v2605_v58, %v3777_v33  ;;  %v2620_v48 = vcombine.high %v2612_v42, %v2612_v42 }
0x1a3b   :  { %v2638_v56 = vcombine.high %v2636_v50, %v2636_v50 }
0x1a3c   :  { %v2621_v59 = vcombine.high %v2619_v7, %v2619_v7 }
0x1a46   :  { %v3386_v37 = vpop.f32.mrb[22].mxu1 }
0x1a47   :  { %v2784_v38 = vpop.f32.mrb[23].mxu1  ;;  %v2812_v2 = vcombine.high %v3386_v37, %v3386_v37  ;;  %v2819_v53 = vrot.slane %v3386_v37, %v3777_v33 }
0x1a48   :  { %v2795_v44 = vcombine.high %v2784_v38, %v2784_v38  ;;  %v2802_v46 = vrot.slane %v2784_v38, %v3777_v33 }
0x1a49   :  { %v2826_v52 = vrot.slane %v2812_v2, %v3777_v33  ;;  %v2827_v61 = vcombine.high %v2819_v53, %v2819_v53 }
0x1a4a   :  { %v2809_v51 = vrot.slane %v2795_v44, %v3777_v33  ;;  %v2810_v63 = vcombine.high %v2802_v46, %v2802_v46 }
0x1a4b   :  { %v2828_v49 = vcombine.high %v2826_v52, %v2826_v52 }
0x1a4c   :  { %v2811_v1 = vcombine.high %v2809_v51, %v2809_v51 }
0x1a95   :  { %v3348_v55 = vpop.f32.mrb[14].mxu0 }
0x1a96   :  { %v2440_v60 = vcombine.high %v3348_v55, %v3348_v55  ;;  %v2447_v57 = vrot.slane %v3348_v55, %v3777_v33  ;;  %v2412_v10 = vpop.f32.mrb[15].mxu0 }
0x1a97   :  { %v2423_v43 = vcombine.high %v2412_v10, %v2412_v10  ;;  %v2430_v31 = vrot.slane %v2412_v10, %v3777_v33 }
0x1a98   :  { %v2454_v28 = vrot.slane %v2440_v60, %v3777_v33  ;;  %v2455_v54 = vcombine.high %v2447_v57, %v2447_v57  ;;  %v2651_v0 = vadd.f32 %v2629_v39, %v2447_v57 }
0x1a99   :  { %v2437_v3 = vrot.slane %v2423_v43, %v3777_v33  ;;  %v2438_v19 = vcombine.high %v2430_v31, %v2430_v31  ;;  %v2647_v47 = vadd.f32 %v2612_v42, %v2430_v31 }
0x1a9a   :  { %v2456_v62 = vcombine.high %v2454_v28, %v2454_v28  ;;  %v2652_v6 = vadd.f32 %v2637_v18, %v2455_v54  ;;  %v2653_v40 = vadd.f32 %v2636_v50, %v2454_v28  ;;  %v2841_v17 = vadd.f32 %v2819_v53, %v2651_v0  ;;  %v3088_v28 = vld [vmem:[%s4385_s7 + $0x18] ss:$0 sm:$0xff]  ;;  %s3631_s7 = scalar_lea.vmem %s3013_s15, 32 }
0x1a9b   :  { %v2439_v8 = vcombine.high %v2437_v3, %v2437_v3  ;;  %v2648_v11 = vadd.f32 %v2620_v48, %v2438_v19  ;;  %v2649_v29 = vadd.f32 %v2619_v7, %v2437_v3  ;;  %v2837_v9 = vadd.f32 %v2802_v46, %v2647_v47  ;;  %p3632_p0 = scmp.ne.s32.totalorder %s3013_s15, %s3631_s7  ;;  %p3637_p2 = scmp.lt.s32.totalorder %s3631_s7, %s3631_s7 }
0x1a9c   :  { %v2654_v12 = vadd.f32 %v2638_v56, %v2456_v62  ;;  %v2842_v23 = vadd.f32 %v2827_v61, %v2652_v6  ;;  %v2843_v13 = vadd.f32 %v2826_v52, %v2653_v40  ;;  %v2855_v15 = vadd.f32 %v3078_v45, %v2841_v17 }
0x1a9d   :  { %v2650_v16 = vadd.f32 %v2621_v59, %v2439_v8  ;;  %v2838_v33 = vadd.f32 %v2810_v63, %v2648_v11  ;;  %v2839_v20 = vadd.f32 %v2809_v51, %v2649_v29  ;;  %v2851_v21 = vadd.f32 %v3078_v45, %v2837_v9  ;;  %p3638_p3 = por %p3637_p2, %p3636_p1 }
0x1a9e   :  { %v2844_v25 = vadd.f32 %v2828_v49, %v2654_v12  ;;  %v2856_v26 = vadd.f32 %v3078_v45, %v2842_v23  ;;  %v2857_v4 = vadd.f32 %v3078_v45, %v2843_v13  ;;  %v2863_v27 = vmax.f32 %v2855_v15, 0.0 }
0x1a9f   :  { %v2840_v22 = vadd.f32 %v2811_v1, %v2650_v16  ;;  %v2852_v24 = vadd.f32 %v3078_v45, %v2838_v33  ;;  %v2853_v30 = vadd.f32 %v3078_v45, %v2839_v20  ;;  %v2859_v34 = vmax.f32 %v2851_v21, 0.0  ;;  %p3639_p4 = pnand %p3638_p3, %p3632_p0 }
0x1aa0   :  { %v2858_v35 = vadd.f32 %v3078_v45, %v2844_v25  ;;  %v2864_v32 = vmax.f32 %v2856_v26, 0.0  ;;  %v2865_v36 = vmax.f32 %v2857_v4, 0.0  ;;  %v2891_v41 = vsel %vm3084_vm8, %v2863_v27, 0.0 }
0x1aa1   :  { %v2900_v37 = vsel %vm2895_vm9, %v2891_v41, -inf  ;;  %v2854_v38 = vadd.f32 %v3078_v45, %v2840_v22  ;;  %v2860_v14 = vmax.f32 %v2852_v24, 0.0  ;;  %v2861_v58 = vmax.f32 %v2853_v30, 0.0 }
0x1aa2   :  { %v2866_v2 = vmax.f32 %v2858_v35, 0.0  ;;  %v2892_v39 = vsel %vm3085_vm10, %v2864_v32, 0.0  ;;  %v2893_v42 = vsel %vm3086_vm11, %v2865_v36, 0.0  ;;  %v2887_v44 = vsel %vm3080_vm12, %v2859_v34, 0.0 }
0x1aa3   :  { %v2902_v50 = vsel %vm2895_vm9, %v2892_v39, -inf  ;;  %v2904_v7 = vsel %vm2895_vm9, %v2893_v42, -inf  ;;  %v2862_v53 = vmax.f32 %v2854_v38, 0.0  ;;  %v2888_v46 = vsel %vm3081_vm13, %v2860_v14, 0.0 }
0x1aa4   :  { %v2894_v52 = vsel %vm3087_vm14, %v2866_v2, 0.0  ;;  %v2889_v18 = vsel %vm3082_vm15, %v2861_v58, 0.0  ;;  %v2896_v48 = vsel %vm2895_vm9, %v2887_v44, -inf  ;;  %v2897_v51 = vsel %vm2895_vm9, %v2888_v46, -inf }
0x1aa5   :  { %v2906_v55 = vsel %vm2895_vm9, %v2894_v52, -inf  ;;  %v2890_v56 = vsel %vm3083_vm0, %v2862_v53, 0.0  ;;  %v2898_v59 = vsel %vm2895_vm9, %v2889_v18, -inf  ;;  %v2901_v60 = vmax.f32 %v2896_v48, %v2900_v37 }
0x1aa6   :  { %v2899_v57 = vsel %vm2895_vm9, %v2890_v56, -inf  ;;  %v2903_v10 = vmax.f32 %v2897_v51, %v2902_v50  ;;  %v2905_v61 = vmax.f32 %v2898_v59, %v2904_v7 }
0x1aa7   :  { %v2907_v63 = vmax.f32 %v2899_v57, %v2906_v55 }
0x1aa8   :  { %v2908_v43 = vmax.f32 %v2901_v60, %v2903_v10 }
0x1aa9   :  { %v2909_v31 = vmax.f32 %v2905_v61, %v2907_v63 }
0x1aab   :  { %v2910_v49 = vmax.f32 %v2908_v43, %v2909_v31 }
0x1aad   :  { %3394 = vmatmul.mubr.msk.f32.vlgmr.msra.gmra.mrb[16].mxu0 %vm2919_vm1, %v2910_v49 }
0x1b80   :  { %v2989_v54 = vpop.f32.mrb[16].mxu0 }
0x1b81   :  { %v2990_v5 = vadd.f32 %v3088_v28, %v2989_v54  ;;  %v3395_v0 = vpop.f32.mrb[17].mxu0 }
0x1b83   :  { %v2994_v1 = vsel %vm2993_vm2, %v2990_v5, -inf }
0x1b84   :  { %2995 = vmax.xlane.f32.xlu1 %v2994_v1 }
0x1c11   :  { %v2996_v45 = vpop.xlane.xlu1 %2995 }
0x1c12   :  { %v2997_v3 = vsub.f32 %v2990_v5, %v2996_v45 }
0x1c14   :  { %v2998_v19 = vmul.f32 1.442695, %v2997_v3 }
0x1c16   :  { %3627 = vpow2.f32 %v2998_v19 }
0x1c20   :  { %v3628_v47 = vpop.eup %3627 }
0x1c21   :  { %v3000_v62 = vsel %vm2993_vm2, %v3628_v47, 0.0 }
0x1c22   :  { %3001 = vadd.xlane.f32.xlu0 %v3000_v62 }
0x1caf   :  { %v3002_v6 = vpop.xlane.xlu0 %3001 }
0x1cb0   :  { %3629 = vrcp.f32 %v3002_v6 }
0x1cba   :  { %v3630_v40 = vpop.eup %3629 }
0x1cbb   :  { %v3004_v17 = vmul.f32 %v3630_v40, %v3628_v47 }
0x1cbd   :  { %3005 = vst.msk [vmem:[#allocation3] sm:$0x3] %vm2993_vm2, %v3004_v17 }
0x1cbe   :  { %3642 = shalt.err (!%p3639_p4)
}
0x1cbf   :  { %s3643_s18 = scalar_lea.hbm %s4386_s8, 32 }
0x1cc0   :  { %p3644_p5 = scmp.ne.s32.totalorder %s4386_s8, %s3643_s18  ;;  %p3647_p6 = scmp.lt.u32.totalorder %s3643_s18, %s4386_s8 }
0x1cc2   :  { %p3649_p7 = pnand %p3647_p6, %p3644_p5 }
0x1cc4   :  { %3652 = shalt.err (!%p3649_p7)
}
0x1cc5   :  { %3015 = dma.vmem_to_hbm [thread:$0]  %s3013_s15, 32, %s4386_s8, [#allocation4]  }
0x1cc6   :  { %3653 = dma.done.wait [#allocation4], 32  }
0x1cc7   :  { %3654 = vsyncadd [#allocation4], 4294967264 }
0x1cc8   :  { %3019 = vsyncpa [#allocation4], 1 }

</bundles_post_ra>
